<compile_context>
chip_gen: v7x
topology: tpu7x:2x2x1
jax: 0.10.0
libtpu: 0.0.40
codegen_flags: <defaults>
</compile_context>

<pallas_src>
import jax
import jax.numpy as jnp
from jax.experimental import pallas as pl
from jax.experimental.pallas import tpu as pltpu

# ----------------------- model hyper-parameters (small) -----------------------
B = 2             # batch
C = 4             # input channels
IMG = 16          # image height/width
PATCH = 8         # patch size  -> 2x2 = 4 patches
N_PATCH = (IMG // PATCH) ** 2
S = N_PATCH + 1   # tokens (cls + patches) = 5
BS = B * S        # stacked token rows = 10
CPP = C * PATCH * PATCH       # flattened patch dim = 256
D = 32            # embed dim (== cls_token.shape[-1] -> classifier in_dim)
NH = 4            # attention heads
DH = D // NH      # head dim
DEPTH = 2         # transformer blocks
MLP = 64          # MLP hidden dim
NUM_CLASSES = 5   # classifier out_dim
LN_EPS = 1e-6     # timm-ViT eps (PyTorch nn.LayerNorm default is 1e-5)

# MXU operand dtype (f32 accumulation). Set to jnp.float32 for exact-f32 math.
_MXU_DTYPE = jnp.bfloat16

# ----------------------- packed weight slab layout (bf16) ---------------------
W_COLS = 128                      # lane-dense width
WROW_PATCH = 0                    # patch_w : CPP rows, D cols
WROW_LAYER = CPP                  # per-layer weights start here
W_LAYER_ROWS = 3 * D + MLP        # qkv(D) + proj(D) + fc1(D) + fc2(MLP) rows = 160
WROW_CLS = WROW_LAYER + DEPTH * W_LAYER_ROWS   # classifier weight
W_ROWS = WROW_CLS + D             # 608

# ----------------------- packed small slab layout (f32) -----------------------
SM_COLS = 128
ROW_PATCH_B = 0                   # patch bias                 (D cols)
ROW_POS = 1                       # cls+pos[0], pos[1:]        (S rows, D cols)
ROW_LAYER = ROW_POS + S           # per-layer small params
ROWS_PER_LAYER = 8                # ln1_g, ln1_b, qkv_b, proj_b, ln2_g, ln2_b, fc1_b, fc2_b
ROW_LNF_G = ROW_LAYER + DEPTH * ROWS_PER_LAYER
ROW_LNF_B = ROW_LNF_G + 1
ROW_CLS_B = ROW_LNF_B + 1
ROW_MASK = ROW_CLS_B + 1          # block-diagonal attention mask (BS rows, BS cols)
SM_ROWS = ROW_MASK + BS


# --------------------------- fused forward kernel ------------------------------
def _vit_kernel(xp_ref, w_ref, sm_ref, o_ref):
    # Whole batch in one invocation; everything below stays in VMEM / vregs.

    def wblk(r0, nrows, ncols):
        return w_ref[r0:r0 + nrows, 0:ncols]           # bf16 weight tile

    def smrow(r, ncols):
        return sm_ref[r:r + 1, 0:ncols]                 # [1, ncols] f32

    def mm(a, b):
        # a @ b on the MXU; weights already bf16, so only activations are cast.
        return jnp.dot(a.astype(_MXU_DTYPE), b.astype(_MXU_DTYPE),
                       preferred_element_type=jnp.float32)

    def mm_t(a, b):
        # a @ b.T by contracting last dims (no explicit XLU transpose).
        return jax.lax.dot_general(
            a.astype(_MXU_DTYPE), b.astype(_MXU_DTYPE),
            (((1,), (1,)), ((), ())), preferred_element_type=jnp.float32)

    def layernorm(x, g, b):
        mu = jnp.mean(x, axis=-1, keepdims=True)
        var = jnp.mean((x - mu) ** 2, axis=-1, keepdims=True)
        return (x - mu) * jax.lax.rsqrt(var + LN_EPS) * g + b

    def gelu(x):
        # TODO(synk): tanh-approx GELU; torch nn.GELU default is the exact erf form.
        c = 0.7978845608028654  # sqrt(2/pi)
        return 0.5 * x * (1.0 + jnp.tanh(c * (x + 0.044715 * x * x * x)))

    # ---- patch embedding for the whole batch: [B*N_PATCH, CPP] @ [CPP, D] ----
    ptok = mm(xp_ref[...], wblk(WROW_PATCH, CPP, D)) + smrow(ROW_PATCH_B, D)

    # ---- token assembly (in vregs): [cls+pos0 ; patches+pos1:] per batch elem ----
    pos = sm_ref[ROW_POS:ROW_POS + S, 0:D]              # [S, D]; row 0 = cls + pos[0]
    pieces = []
    for b in range(B):
        pieces.append(pos[0:1, :])
        pieces.append(ptok[b * N_PATCH:(b + 1) * N_PATCH, :] + pos[1:S, :])
    x = jnp.concatenate(pieces, axis=0)                  # [B*S, D] f32

    # Block-diagonal mask: attention for all batch rows runs as one [B*S, B*S].
    mask = sm_ref[ROW_MASK:ROW_MASK + BS, 0:BS]          # 0 within, -1e30 across batch

    for l in range(DEPTH):                               # static depth loop
        base_w = WROW_LAYER + l * W_LAYER_ROWS
        base_s = ROW_LAYER + l * ROWS_PER_LAYER

        # ---- multi-head self-attention (pre-LN); 1/sqrt(DH) folded into Q weights ----
        h = layernorm(x, smrow(base_s + 0, D), smrow(base_s + 1, D))
        qkv = mm(h, wblk(base_w, D, 3 * D)) + smrow(base_s + 2, 3 * D)   # [B*S, 3D]
        heads = []
        for hd in range(NH):                             # static head loop, stays in vregs
            q = qkv[:, hd * DH:(hd + 1) * DH]
            k = qkv[:, D + hd * DH:D + (hd + 1) * DH]
            v = qkv[:, 2 * D + hd * DH:2 * D + (hd + 1) * DH]
            s = mm_t(q, k) + mask                        # [B*S, B*S], block-diagonal
            s = s - jnp.max(s, axis=-1, keepdims=True)
            p = jnp.exp(s)
            inv = pl.reciprocal(jnp.sum(p, axis=-1, keepdims=True), approx=True)
            heads.append(mm(p, v) * inv)                 # [B*S, DH]
        attn = jnp.concatenate(heads, axis=-1)           # [B*S, D]
        x = x + mm(attn, wblk(base_w + D, D, D)) + smrow(base_s + 3, D)

        # ---- MLP (pre-LN) ----
        h = layernorm(x, smrow(base_s + 4, D), smrow(base_s + 5, D))
        h = gelu(mm(h, wblk(base_w + 2 * D, D, MLP)) + smrow(base_s + 6, MLP))
        x = x + mm(h, wblk(base_w + 3 * D, MLP, D)) + smrow(base_s + 7, D)

    # ---- final LN + classifier head on the CLS token of each batch element ----
    x = layernorm(x, smrow(ROW_LNF_G, D), smrow(ROW_LNF_B, D))
    cls_rows = jnp.concatenate([x[b * S:b * S + 1, :] for b in range(B)], axis=0)  # [B, D]
    logits = mm(cls_rows, wblk(WROW_CLS, D, NUM_CLASSES)) + smrow(ROW_CLS_B, NUM_CLASSES)
    o_ref[...] = logits.astype(o_ref.dtype)              # one dense [B, NUM_CLASSES] store


# ------------------------------ parameter init --------------------------------
# TODO(synk): "pretrained_model" weights are synthetic (no checkpoint load).
def init_params(key):
    def normal(k, shape, std=0.02):
        return (std * jax.random.normal(k, shape)).astype(jnp.float32)

    k = jax.random.split(key, 4 + 4 * DEPTH)
    return {
        "patch_w": normal(k[0], (CPP, D)),   # unfold order (C, Ph, Pw) flattened
        "patch_b": jnp.zeros((1, D), jnp.float32),
        "cls_token": normal(k[1], (1, D)),
        "pos_embed": normal(k[2], (S, D)),
        "ln1_g": jnp.ones((DEPTH, 1, D), jnp.float32),
        "ln1_b": jnp.zeros((DEPTH, 1, D), jnp.float32),
        "qkv_w": jnp.stack([normal(k[4 + 4 * i + 0], (D, 3 * D)) for i in range(DEPTH)]),
        "qkv_b": jnp.zeros((DEPTH, 1, 3 * D), jnp.float32),
        "proj_w": jnp.stack([normal(k[4 + 4 * i + 1], (D, D)) for i in range(DEPTH)]),
        "proj_b": jnp.zeros((DEPTH, 1, D), jnp.float32),
        "ln2_g": jnp.ones((DEPTH, 1, D), jnp.float32),
        "ln2_b": jnp.zeros((DEPTH, 1, D), jnp.float32),
        "fc1_w": jnp.stack([normal(k[4 + 4 * i + 2], (D, MLP)) for i in range(DEPTH)]),
        "fc1_b": jnp.zeros((DEPTH, 1, MLP), jnp.float32),
        "fc2_w": jnp.stack([normal(k[4 + 4 * i + 3], (MLP, D)) for i in range(DEPTH)]),
        "fc2_b": jnp.zeros((DEPTH, 1, D), jnp.float32),
        "ln_f_g": jnp.ones((1, D), jnp.float32),
        "ln_f_b": jnp.zeros((1, D), jnp.float32),
        "cls_w": normal(k[3], (D, NUM_CLASSES)),
        "cls_b": jnp.zeros((1, NUM_CLASSES), jnp.float32),
    }


def pack_params(params):
    """Pack the 21 weight/bias arrays into 2 VMEM-friendly slabs (done once)."""
    scale_vec = jnp.concatenate([jnp.full((D,), 1.0 / (DH ** 0.5), jnp.float32),
                                 jnp.ones((2 * D,), jnp.float32)])   # fold 1/sqrt(DH) into Q

    # ---- matmul-weight slab (bf16), lane-padded to width 128 ----
    w = jnp.zeros((W_ROWS, W_COLS), jnp.float32)
    w = w.at[WROW_PATCH:WROW_PATCH + CPP, 0:D].set(params["patch_w"])
    for l in range(DEPTH):
        base = WROW_LAYER + l * W_LAYER_ROWS
        w = w.at[base:base + D, 0:3 * D].set(params["qkv_w"][l] * scale_vec[None, :])
        w = w.at[base + D:base + 2 * D, 0:D].set(params["proj_w"][l])
        w = w.at[base + 2 * D:base + 3 * D, 0:MLP].set(params["fc1_w"][l])
        w = w.at[base + 3 * D:base + 3 * D + MLP, 0:D].set(params["fc2_w"][l])
    w = w.at[WROW_CLS:WROW_CLS + D, 0:NUM_CLASSES].set(params["cls_w"])
    w_slab = w.astype(_MXU_DTYPE)

    # ---- small-params slab (f32): biases, LN, (cls+pos), classifier bias, mask ----
    sm = jnp.zeros((SM_ROWS, SM_COLS), jnp.float32)
    sm = sm.at[ROW_PATCH_B, 0:D].set(params["patch_b"][0])
    pos_eff = params["pos_embed"].at[0].add(params["cls_token"][0])   # pre-add cls token
    sm = sm.at[ROW_POS:ROW_POS + S, 0:D].set(pos_eff)
    for l in range(DEPTH):
        base = ROW_LAYER + l * ROWS_PER_LAYER
        sm = sm.at[base + 0, 0:D].set(params["ln1_g"][l, 0])
        sm = sm.at[base + 1, 0:D].set(params["ln1_b"][l, 0])
        sm = sm.at[base + 2, 0:3 * D].set(params["qkv_b"][l, 0] * scale_vec)
        sm = sm.at[base + 3, 0:D].set(params["proj_b"][l, 0])
        sm = sm.at[base + 4, 0:D].set(params["ln2_g"][l, 0])
        sm = sm.at[base + 5, 0:D].set(params["ln2_b"][l, 0])
        sm = sm.at[base + 6, 0:MLP].set(params["fc1_b"][l, 0])
        sm = sm.at[base + 7, 0:D].set(params["fc2_b"][l, 0])
    sm = sm.at[ROW_LNF_G, 0:D].set(params["ln_f_g"][0])
    sm = sm.at[ROW_LNF_B, 0:D].set(params["ln_f_b"][0])
    sm = sm.at[ROW_CLS_B, 0:NUM_CLASSES].set(params["cls_b"][0])
    # block-diagonal attention mask (0 within a batch element, -1e30 across)
    bidx = jnp.arange(BS) // S
    mask = jnp.where(bidx[:, None] == bidx[None, :], 0.0, -1e30).astype(jnp.float32)
    sm = sm.at[ROW_MASK:ROW_MASK + BS, 0:BS].set(mask)
    return w_slab, sm


# ------------------------------ forward (wrapper) ------------------------------
@jax.jit
def forward(w_slab, sm_slab, x):
    # VisionTransformerWithClassifier.forward:
    #   features = self.vit(x); return self.classifier(features)
    assert x.shape == (B, C, IMG, IMG), x.shape
    P = PATCH

    # Patchify (conv k=P, stride=P == unfold, (C, Ph, Pw) flattening order):
    # single XLA reshape/transpose feeding the fused kernel; cast once to bf16.
    xp = x.reshape(B, C, IMG // P, P, IMG // P, P)
    xp = jnp.transpose(xp, (0, 2, 4, 1, 3, 5)).reshape(B * N_PATCH, CPP)
    xp = xp.astype(_MXU_DTYPE)

    logits = pl.pallas_call(
        _vit_kernel,
        out_shape=jax.ShapeDtypeStruct((B, NUM_CLASSES), jnp.float32),
        in_specs=[pl.BlockSpec(memory_space=pltpu.MemorySpace.VMEM)] * 3,
        out_specs=pl.BlockSpec(memory_space=pltpu.MemorySpace.VMEM),
    )(xp, w_slab, sm_slab)
    return logits                                        # [B, NUM_CLASSES]


# ---------------------------------- main ---------------------------------------
if __name__ == "__main__":
    key = jax.random.PRNGKey(0)
    pkey, xkey = jax.random.split(key)
    params = init_params(pkey)
    w_slab, sm_slab = pack_params(params)
    x = jax.random.normal(xkey, (B, C, IMG, IMG), dtype=jnp.float32)  # NCHW

    logits = forward(w_slab, sm_slab, x)
    jax.block_until_ready(logits)
    assert logits.shape == (B, NUM_CLASSES), logits.shape
    print("KERNEL_OK")
</pallas_src>

<mosaic_0001>
module attributes {stable_mosaic.version = 11 : i64} {
  func.func @_vit_kernel(%arg0: memref<8x256xbf16, #tpu.memory_space<vmem>>, %arg1: memref<608x128xbf16, #tpu.memory_space<vmem>>, %arg2: memref<35x128xf32, #tpu.memory_space<vmem>>, %arg3: memref<2x5xf32, #tpu.memory_space<vmem>>) attributes {dimension_semantics = [], scalar_prefetch = 0 : i64, scratch_operands = 0 : i64, tpu.core_type = #tpu.core_type<tc>} {
    %c0 = arith.constant 0 : index
    %c0_0 = arith.constant 0 : index
    %0 = vector.load %arg0[%c0, %c0_0] : memref<8x256xbf16, #tpu.memory_space<vmem>>, vector<8x256xbf16>
    %c0_1 = arith.constant 0 : index
    %c0_2 = arith.constant 0 : index
    %1 = vector.load %arg1[%c0_1, %c0_2] : memref<608x128xbf16, #tpu.memory_space<vmem>>, vector<256x32xbf16>
    %cst = arith.constant dense<0.000000e+00> : vector<8x32xf32>
    %2 = tpu.matmul %0, %1, %cst {dimension_numbers = #tpu.dot_dimension_numbers<[1], [0], [0], [1], [0, 0, 1, 1], [], []>} : vector<8x256xbf16>, vector<256x32xbf16>, vector<8x32xf32> -> vector<8x32xf32>
    %c0_3 = arith.constant 0 : index
    %c0_4 = arith.constant 0 : index
    %3 = vector.load %arg2[%c0_3, %c0_4] : memref<35x128xf32, #tpu.memory_space<vmem>>, vector<1x32xf32>
    %4 = vector.broadcast %3 : vector<1x32xf32> to vector<8x32xf32>
    %5 = arith.addf %2, %4 : vector<8x32xf32>
    %c1 = arith.constant 1 : index
    %c0_5 = arith.constant 0 : index
    %6 = vector.load %arg2[%c1, %c0_5] : memref<35x128xf32, #tpu.memory_space<vmem>>, vector<5x32xf32>
    %7 = vector.extract_strided_slice %6 {offsets = [0, 0], sizes = [1, 32], strides = [1, 1]} : vector<5x32xf32> to vector<1x32xf32>
    %8 = vector.extract_strided_slice %5 {offsets = [0, 0], sizes = [4, 32], strides = [1, 1]} : vector<8x32xf32> to vector<4x32xf32>
    %9 = vector.extract_strided_slice %6 {offsets = [1, 0], sizes = [4, 32], strides = [1, 1]} : vector<5x32xf32> to vector<4x32xf32>
    %10 = arith.addf %8, %9 : vector<4x32xf32>
    %11 = vector.extract_strided_slice %6 {offsets = [0, 0], sizes = [1, 32], strides = [1, 1]} : vector<5x32xf32> to vector<1x32xf32>
    %12 = vector.extract_strided_slice %5 {offsets = [4, 0], sizes = [4, 32], strides = [1, 1]} : vector<8x32xf32> to vector<4x32xf32>
    %13 = vector.extract_strided_slice %6 {offsets = [1, 0], sizes = [4, 32], strides = [1, 1]} : vector<5x32xf32> to vector<4x32xf32>
    %14 = arith.addf %12, %13 : vector<4x32xf32>
    %15 = tpu.concatenate %7, %10, %11, %14 in 0 : vector<1x32xf32>, vector<4x32xf32>, vector<1x32xf32>, vector<4x32xf32> -> vector<10x32xf32>
    %c25 = arith.constant 25 : index
    %c0_6 = arith.constant 0 : index
    %16 = vector.load %arg2[%c25, %c0_6] : memref<35x128xf32, #tpu.memory_space<vmem>>, vector<10x10xf32>
    %c6 = arith.constant 6 : index
    %c0_7 = arith.constant 0 : index
    %17 = vector.load %arg2[%c6, %c0_7] : memref<35x128xf32, #tpu.memory_space<vmem>>, vector<1x32xf32>
    %c7 = arith.constant 7 : index
    %c0_8 = arith.constant 0 : index
    %18 = vector.load %arg2[%c7, %c0_8] : memref<35x128xf32, #tpu.memory_space<vmem>>, vector<1x32xf32>
    %cst_9 = arith.constant dense<0.000000e+00> : vector<10xf32>
    %19 = vector.multi_reduction <add>, %15, %cst_9 [1] : vector<10x32xf32> to vector<10xf32>
    %20 = vector.shape_cast %19 : vector<10xf32> to vector<10x1xf32>
    %cst_10 = arith.constant 3.200000e+01 : f32
    %21 = vector.broadcast %cst_10 : f32 to vector<10x1xf32>
    %22 = arith.divf %20, %21 : vector<10x1xf32>
    %23 = vector.broadcast %22 : vector<10x1xf32> to vector<10x32xf32>
    %24 = arith.subf %15, %23 : vector<10x32xf32>
    %25 = arith.mulf %24, %24 : vector<10x32xf32>
    %cst_11 = arith.constant dense<0.000000e+00> : vector<10xf32>
    %26 = vector.multi_reduction <add>, %25, %cst_11 [1] : vector<10x32xf32> to vector<10xf32>
    %27 = vector.shape_cast %26 : vector<10xf32> to vector<10x1xf32>
    %cst_12 = arith.constant 3.200000e+01 : f32
    %28 = vector.broadcast %cst_12 : f32 to vector<10x1xf32>
    %29 = arith.divf %27, %28 : vector<10x1xf32>
    %30 = vector.broadcast %22 : vector<10x1xf32> to vector<10x32xf32>
    %31 = arith.subf %15, %30 : vector<10x32xf32>
    %cst_13 = arith.constant 9.99999997E-7 : f32
    %32 = vector.broadcast %cst_13 : f32 to vector<10x1xf32>
    %33 = arith.addf %29, %32 : vector<10x1xf32>
    %34 = math.rsqrt %33 : vector<10x1xf32>
    %35 = vector.broadcast %34 : vector<10x1xf32> to vector<10x32xf32>
    %36 = arith.mulf %31, %35 : vector<10x32xf32>
    %37 = vector.broadcast %17 : vector<1x32xf32> to vector<10x32xf32>
    %38 = arith.mulf %36, %37 : vector<10x32xf32>
    %39 = vector.broadcast %18 : vector<1x32xf32> to vector<10x32xf32>
    %40 = arith.addf %38, %39 : vector<10x32xf32>
    %c256 = arith.constant 256 : index
    %c0_14 = arith.constant 0 : index
    %41 = vector.load %arg1[%c256, %c0_14] : memref<608x128xbf16, #tpu.memory_space<vmem>>, vector<32x96xbf16>
    %42 = arith.truncf %40 : vector<10x32xf32> to vector<10x32xbf16>
    %cst_15 = arith.constant dense<0.000000e+00> : vector<10x96xf32>
    %43 = tpu.matmul %42, %41, %cst_15 {dimension_numbers = #tpu.dot_dimension_numbers<[1], [0], [0], [1], [0, 0, 1, 1], [], []>} : vector<10x32xbf16>, vector<32x96xbf16>, vector<10x96xf32> -> vector<10x96xf32>
    %c8 = arith.constant 8 : index
    %c0_16 = arith.constant 0 : index
    %44 = vector.load %arg2[%c8, %c0_16] : memref<35x128xf32, #tpu.memory_space<vmem>>, vector<1x96xf32>
    %45 = vector.broadcast %44 : vector<1x96xf32> to vector<10x96xf32>
    %46 = arith.addf %43, %45 : vector<10x96xf32>
    %47 = vector.extract_strided_slice %46 {offsets = [0, 0], sizes = [10, 8], strides = [1, 1]} : vector<10x96xf32> to vector<10x8xf32>
    %48 = vector.extract_strided_slice %46 {offsets = [0, 32], sizes = [10, 8], strides = [1, 1]} : vector<10x96xf32> to vector<10x8xf32>
    %49 = vector.extract_strided_slice %46 {offsets = [0, 64], sizes = [10, 8], strides = [1, 1]} : vector<10x96xf32> to vector<10x8xf32>
    %50 = arith.truncf %47 : vector<10x8xf32> to vector<10x8xbf16>
    %51 = arith.truncf %48 : vector<10x8xf32> to vector<10x8xbf16>
    %cst_17 = arith.constant dense<0.000000e+00> : vector<10x10xf32>
    %52 = tpu.matmul %50, %51, %cst_17 {dimension_numbers = #tpu.dot_dimension_numbers<[1], [1], [0], [0], [0, 0, 1, 0], [], []>} : vector<10x8xbf16>, vector<10x8xbf16>, vector<10x10xf32> -> vector<10x10xf32>
    %53 = arith.addf %52, %16 : vector<10x10xf32>
    %cst_18 = arith.constant dense<0xFF800000> : vector<10xf32>
    %54 = vector.multi_reduction <maximumf>, %53, %cst_18 [1] : vector<10x10xf32> to vector<10xf32>
    %55 = vector.shape_cast %54 : vector<10xf32> to vector<10x1xf32>
    %56 = vector.broadcast %55 : vector<10x1xf32> to vector<10x10xf32>
    %57 = arith.subf %53, %56 : vector<10x10xf32>
    %58 = math.exp %57 : vector<10x10xf32>
    %cst_19 = arith.constant dense<0.000000e+00> : vector<10xf32>
    %59 = vector.multi_reduction <add>, %58, %cst_19 [1] : vector<10x10xf32> to vector<10xf32>
    %60 = vector.shape_cast %59 : vector<10xf32> to vector<10x1xf32>
    %61 = tpu.reciprocal %60 {approx = true} : vector<10x1xf32> -> vector<10x1xf32>
    %62 = arith.truncf %58 : vector<10x10xf32> to vector<10x10xbf16>
    %63 = arith.truncf %49 : vector<10x8xf32> to vector<10x8xbf16>
    %cst_20 = arith.constant dense<0.000000e+00> : vector<10x8xf32>
    %64 = tpu.matmul %62, %63, %cst_20 {dimension_numbers = #tpu.dot_dimension_numbers<[1], [0], [0], [1], [0, 0, 1, 1], [], []>} : vector<10x10xbf16>, vector<10x8xbf16>, vector<10x8xf32> -> vector<10x8xf32>
    %65 = vector.broadcast %61 : vector<10x1xf32> to vector<10x8xf32>
    %66 = arith.mulf %64, %65 : vector<10x8xf32>
    %67 = vector.extract_strided_slice %46 {offsets = [0, 8], sizes = [10, 8], strides = [1, 1]} : vector<10x96xf32> to vector<10x8xf32>
    %68 = vector.extract_strided_slice %46 {offsets = [0, 40], sizes = [10, 8], strides = [1, 1]} : vector<10x96xf32> to vector<10x8xf32>
    %69 = vector.extract_strided_slice %46 {offsets = [0, 72], sizes = [10, 8], strides = [1, 1]} : vector<10x96xf32> to vector<10x8xf32>
    %70 = arith.truncf %67 : vector<10x8xf32> to vector<10x8xbf16>
    %71 = arith.truncf %68 : vector<10x8xf32> to vector<10x8xbf16>
    %cst_21 = arith.constant dense<0.000000e+00> : vector<10x10xf32>
    %72 = tpu.matmul %70, %71, %cst_21 {dimension_numbers = #tpu.dot_dimension_numbers<[1], [1], [0], [0], [0, 0, 1, 0], [], []>} : vector<10x8xbf16>, vector<10x8xbf16>, vector<10x10xf32> -> vector<10x10xf32>
    %73 = arith.addf %72, %16 : vector<10x10xf32>
    %cst_22 = arith.constant dense<0xFF800000> : vector<10xf32>
    %74 = vector.multi_reduction <maximumf>, %73, %cst_22 [1] : vector<10x10xf32> to vector<10xf32>
    %75 = vector.shape_cast %74 : vector<10xf32> to vector<10x1xf32>
    %76 = vector.broadcast %75 : vector<10x1xf32> to vector<10x10xf32>
    %77 = arith.subf %73, %76 : vector<10x10xf32>
    %78 = math.exp %77 : vector<10x10xf32>
    %cst_23 = arith.constant dense<0.000000e+00> : vector<10xf32>
    %79 = vector.multi_reduction <add>, %78, %cst_23 [1] : vector<10x10xf32> to vector<10xf32>
    %80 = vector.shape_cast %79 : vector<10xf32> to vector<10x1xf32>
    %81 = tpu.reciprocal %80 {approx = true} : vector<10x1xf32> -> vector<10x1xf32>
    %82 = arith.truncf %78 : vector<10x10xf32> to vector<10x10xbf16>
    %83 = arith.truncf %69 : vector<10x8xf32> to vector<10x8xbf16>
    %cst_24 = arith.constant dense<0.000000e+00> : vector<10x8xf32>
    %84 = tpu.matmul %82, %83, %cst_24 {dimension_numbers = #tpu.dot_dimension_numbers<[1], [0], [0], [1], [0, 0, 1, 1], [], []>} : vector<10x10xbf16>, vector<10x8xbf16>, vector<10x8xf32> -> vector<10x8xf32>
    %85 = vector.broadcast %81 : vector<10x1xf32> to vector<10x8xf32>
    %86 = arith.mulf %84, %85 : vector<10x8xf32>
    %87 = vector.extract_strided_slice %46 {offsets = [0, 16], sizes = [10, 8], strides = [1, 1]} : vector<10x96xf32> to vector<10x8xf32>
    %88 = vector.extract_strided_slice %46 {offsets = [0, 48], sizes = [10, 8], strides = [1, 1]} : vector<10x96xf32> to vector<10x8xf32>
    %89 = vector.extract_strided_slice %46 {offsets = [0, 80], sizes = [10, 8], strides = [1, 1]} : vector<10x96xf32> to vector<10x8xf32>
    %90 = arith.truncf %87 : vector<10x8xf32> to vector<10x8xbf16>
    %91 = arith.truncf %88 : vector<10x8xf32> to vector<10x8xbf16>
    %cst_25 = arith.constant dense<0.000000e+00> : vector<10x10xf32>
    %92 = tpu.matmul %90, %91, %cst_25 {dimension_numbers = #tpu.dot_dimension_numbers<[1], [1], [0], [0], [0, 0, 1, 0], [], []>} : vector<10x8xbf16>, vector<10x8xbf16>, vector<10x10xf32> -> vector<10x10xf32>
    %93 = arith.addf %92, %16 : vector<10x10xf32>
    %cst_26 = arith.constant dense<0xFF800000> : vector<10xf32>
    %94 = vector.multi_reduction <maximumf>, %93, %cst_26 [1] : vector<10x10xf32> to vector<10xf32>
    %95 = vector.shape_cast %94 : vector<10xf32> to vector<10x1xf32>
    %96 = vector.broadcast %95 : vector<10x1xf32> to vector<10x10xf32>
    %97 = arith.subf %93, %96 : vector<10x10xf32>
    %98 = math.exp %97 : vector<10x10xf32>
    %cst_27 = arith.constant dense<0.000000e+00> : vector<10xf32>
    %99 = vector.multi_reduction <add>, %98, %cst_27 [1] : vector<10x10xf32> to vector<10xf32>
    %100 = vector.shape_cast %99 : vector<10xf32> to vector<10x1xf32>
    %101 = tpu.reciprocal %100 {approx = true} : vector<10x1xf32> -> vector<10x1xf32>
    %102 = arith.truncf %98 : vector<10x10xf32> to vector<10x10xbf16>
    %103 = arith.truncf %89 : vector<10x8xf32> to vector<10x8xbf16>
    %cst_28 = arith.constant dense<0.000000e+00> : vector<10x8xf32>
    %104 = tpu.matmul %102, %103, %cst_28 {dimension_numbers = #tpu.dot_dimension_numbers<[1], [0], [0], [1], [0, 0, 1, 1], [], []>} : vector<10x10xbf16>, vector<10x8xbf16>, vector<10x8xf32> -> vector<10x8xf32>
    %105 = vector.broadcast %101 : vector<10x1xf32> to vector<10x8xf32>
    %106 = arith.mulf %104, %105 : vector<10x8xf32>
    %107 = vector.extract_strided_slice %46 {offsets = [0, 24], sizes = [10, 8], strides = [1, 1]} : vector<10x96xf32> to vector<10x8xf32>
    %108 = vector.extract_strided_slice %46 {offsets = [0, 56], sizes = [10, 8], strides = [1, 1]} : vector<10x96xf32> to vector<10x8xf32>
    %109 = vector.extract_strided_slice %46 {offsets = [0, 88], sizes = [10, 8], strides = [1, 1]} : vector<10x96xf32> to vector<10x8xf32>
    %110 = arith.truncf %107 : vector<10x8xf32> to vector<10x8xbf16>
    %111 = arith.truncf %108 : vector<10x8xf32> to vector<10x8xbf16>
    %cst_29 = arith.constant dense<0.000000e+00> : vector<10x10xf32>
    %112 = tpu.matmul %110, %111, %cst_29 {dimension_numbers = #tpu.dot_dimension_numbers<[1], [1], [0], [0], [0, 0, 1, 0], [], []>} : vector<10x8xbf16>, vector<10x8xbf16>, vector<10x10xf32> -> vector<10x10xf32>
    %113 = arith.addf %112, %16 : vector<10x10xf32>
    %cst_30 = arith.constant dense<0xFF800000> : vector<10xf32>
    %114 = vector.multi_reduction <maximumf>, %113, %cst_30 [1] : vector<10x10xf32> to vector<10xf32>
    %115 = vector.shape_cast %114 : vector<10xf32> to vector<10x1xf32>
    %116 = vector.broadcast %115 : vector<10x1xf32> to vector<10x10xf32>
    %117 = arith.subf %113, %116 : vector<10x10xf32>
    %118 = math.exp %117 : vector<10x10xf32>
    %cst_31 = arith.constant dense<0.000000e+00> : vector<10xf32>
    %119 = vector.multi_reduction <add>, %118, %cst_31 [1] : vector<10x10xf32> to vector<10xf32>
    %120 = vector.shape_cast %119 : vector<10xf32> to vector<10x1xf32>
    %121 = tpu.reciprocal %120 {approx = true} : vector<10x1xf32> -> vector<10x1xf32>
    %122 = arith.truncf %118 : vector<10x10xf32> to vector<10x10xbf16>
    %123 = arith.truncf %109 : vector<10x8xf32> to vector<10x8xbf16>
    %cst_32 = arith.constant dense<0.000000e+00> : vector<10x8xf32>
    %124 = tpu.matmul %122, %123, %cst_32 {dimension_numbers = #tpu.dot_dimension_numbers<[1], [0], [0], [1], [0, 0, 1, 1], [], []>} : vector<10x10xbf16>, vector<10x8xbf16>, vector<10x8xf32> -> vector<10x8xf32>
    %125 = vector.broadcast %121 : vector<10x1xf32> to vector<10x8xf32>
    %126 = arith.mulf %124, %125 : vector<10x8xf32>
    %127 = tpu.concatenate %66, %86, %106, %126 in 1 : vector<10x8xf32>, vector<10x8xf32>, vector<10x8xf32>, vector<10x8xf32> -> vector<10x32xf32>
    %c288 = arith.constant 288 : index
    %c0_33 = arith.constant 0 : index
    %128 = vector.load %arg1[%c288, %c0_33] : memref<608x128xbf16, #tpu.memory_space<vmem>>, vector<32x32xbf16>
    %129 = arith.truncf %127 : vector<10x32xf32> to vector<10x32xbf16>
    %cst_34 = arith.constant dense<0.000000e+00> : vector<10x32xf32>
    %130 = tpu.matmul %129, %128, %cst_34 {dimension_numbers = #tpu.dot_dimension_numbers<[1], [0], [0], [1], [0, 0, 1, 1], [], []>} : vector<10x32xbf16>, vector<32x32xbf16>, vector<10x32xf32> -> vector<10x32xf32>
    %131 = arith.addf %15, %130 : vector<10x32xf32>
    %c9 = arith.constant 9 : index
    %c0_35 = arith.constant 0 : index
    %132 = vector.load %arg2[%c9, %c0_35] : memref<35x128xf32, #tpu.memory_space<vmem>>, vector<1x32xf32>
    %133 = vector.broadcast %132 : vector<1x32xf32> to vector<10x32xf32>
    %134 = arith.addf %131, %133 : vector<10x32xf32>
    %c10 = arith.constant 10 : index
    %c0_36 = arith.constant 0 : index
    %135 = vector.load %arg2[%c10, %c0_36] : memref<35x128xf32, #tpu.memory_space<vmem>>, vector<1x32xf32>
    %c11 = arith.constant 11 : index
    %c0_37 = arith.constant 0 : index
    %136 = vector.load %arg2[%c11, %c0_37] : memref<35x128xf32, #tpu.memory_space<vmem>>, vector<1x32xf32>
    %cst_38 = arith.constant dense<0.000000e+00> : vector<10xf32>
    %137 = vector.multi_reduction <add>, %134, %cst_38 [1] : vector<10x32xf32> to vector<10xf32>
    %138 = vector.shape_cast %137 : vector<10xf32> to vector<10x1xf32>
    %cst_39 = arith.constant 3.200000e+01 : f32
    %139 = vector.broadcast %cst_39 : f32 to vector<10x1xf32>
    %140 = arith.divf %138, %139 : vector<10x1xf32>
    %141 = vector.broadcast %140 : vector<10x1xf32> to vector<10x32xf32>
    %142 = arith.subf %134, %141 : vector<10x32xf32>
    %143 = arith.mulf %142, %142 : vector<10x32xf32>
    %cst_40 = arith.constant dense<0.000000e+00> : vector<10xf32>
    %144 = vector.multi_reduction <add>, %143, %cst_40 [1] : vector<10x32xf32> to vector<10xf32>
    %145 = vector.shape_cast %144 : vector<10xf32> to vector<10x1xf32>
    %cst_41 = arith.constant 3.200000e+01 : f32
    %146 = vector.broadcast %cst_41 : f32 to vector<10x1xf32>
    %147 = arith.divf %145, %146 : vector<10x1xf32>
    %148 = vector.broadcast %140 : vector<10x1xf32> to vector<10x32xf32>
    %149 = arith.subf %134, %148 : vector<10x32xf32>
    %cst_42 = arith.constant 9.99999997E-7 : f32
    %150 = vector.broadcast %cst_42 : f32 to vector<10x1xf32>
    %151 = arith.addf %147, %150 : vector<10x1xf32>
    %152 = math.rsqrt %151 : vector<10x1xf32>
    %153 = vector.broadcast %152 : vector<10x1xf32> to vector<10x32xf32>
    %154 = arith.mulf %149, %153 : vector<10x32xf32>
    %155 = vector.broadcast %135 : vector<1x32xf32> to vector<10x32xf32>
    %156 = arith.mulf %154, %155 : vector<10x32xf32>
    %157 = vector.broadcast %136 : vector<1x32xf32> to vector<10x32xf32>
    %158 = arith.addf %156, %157 : vector<10x32xf32>
    %c320 = arith.constant 320 : index
    %c0_43 = arith.constant 0 : index
    %159 = vector.load %arg1[%c320, %c0_43] : memref<608x128xbf16, #tpu.memory_space<vmem>>, vector<32x64xbf16>
    %160 = arith.truncf %158 : vector<10x32xf32> to vector<10x32xbf16>
    %cst_44 = arith.constant dense<0.000000e+00> : vector<10x64xf32>
    %161 = tpu.matmul %160, %159, %cst_44 {dimension_numbers = #tpu.dot_dimension_numbers<[1], [0], [0], [1], [0, 0, 1, 1], [], []>} : vector<10x32xbf16>, vector<32x64xbf16>, vector<10x64xf32> -> vector<10x64xf32>
    %c12 = arith.constant 12 : index
    %c0_45 = arith.constant 0 : index
    %162 = vector.load %arg2[%c12, %c0_45] : memref<35x128xf32, #tpu.memory_space<vmem>>, vector<1x64xf32>
    %163 = vector.broadcast %162 : vector<1x64xf32> to vector<10x64xf32>
    %164 = arith.addf %161, %163 : vector<10x64xf32>
    %cst_46 = arith.constant 5.000000e-01 : f32
    %165 = vector.broadcast %cst_46 : f32 to vector<10x64xf32>
    %166 = arith.mulf %165, %164 : vector<10x64xf32>
    %cst_47 = arith.constant 4.471500e-02 : f32
    %167 = vector.broadcast %cst_47 : f32 to vector<10x64xf32>
    %168 = arith.mulf %167, %164 : vector<10x64xf32>
    %169 = arith.mulf %168, %164 : vector<10x64xf32>
    %170 = arith.mulf %169, %164 : vector<10x64xf32>
    %171 = arith.addf %164, %170 : vector<10x64xf32>
    %cst_48 = arith.constant 0.797884583 : f32
    %172 = vector.broadcast %cst_48 : f32 to vector<10x64xf32>
    %173 = arith.mulf %172, %171 : vector<10x64xf32>
    %174 = math.tanh %173 : vector<10x64xf32>
    %cst_49 = arith.constant 1.000000e+00 : f32
    %175 = vector.broadcast %cst_49 : f32 to vector<10x64xf32>
    %176 = arith.addf %175, %174 : vector<10x64xf32>
    %177 = arith.mulf %166, %176 : vector<10x64xf32>
    %c352 = arith.constant 352 : index
    %c0_50 = arith.constant 0 : index
    %178 = vector.load %arg1[%c352, %c0_50] : memref<608x128xbf16, #tpu.memory_space<vmem>>, vector<64x32xbf16>
    %179 = arith.truncf %177 : vector<10x64xf32> to vector<10x64xbf16>
    %cst_51 = arith.constant dense<0.000000e+00> : vector<10x32xf32>
    %180 = tpu.matmul %179, %178, %cst_51 {dimension_numbers = #tpu.dot_dimension_numbers<[1], [0], [0], [1], [0, 0, 1, 1], [], []>} : vector<10x64xbf16>, vector<64x32xbf16>, vector<10x32xf32> -> vector<10x32xf32>
    %181 = arith.addf %134, %180 : vector<10x32xf32>
    %c13 = arith.constant 13 : index
    %c0_52 = arith.constant 0 : index
    %182 = vector.load %arg2[%c13, %c0_52] : memref<35x128xf32, #tpu.memory_space<vmem>>, vector<1x32xf32>
    %183 = vector.broadcast %182 : vector<1x32xf32> to vector<10x32xf32>
    %184 = arith.addf %181, %183 : vector<10x32xf32>
    %c14 = arith.constant 14 : index
    %c0_53 = arith.constant 0 : index
    %185 = vector.load %arg2[%c14, %c0_53] : memref<35x128xf32, #tpu.memory_space<vmem>>, vector<1x32xf32>
    %c15 = arith.constant 15 : index
    %c0_54 = arith.constant 0 : index
    %186 = vector.load %arg2[%c15, %c0_54] : memref<35x128xf32, #tpu.memory_space<vmem>>, vector<1x32xf32>
    %cst_55 = arith.constant dense<0.000000e+00> : vector<10xf32>
    %187 = vector.multi_reduction <add>, %184, %cst_55 [1] : vector<10x32xf32> to vector<10xf32>
    %188 = vector.shape_cast %187 : vector<10xf32> to vector<10x1xf32>
    %cst_56 = arith.constant 3.200000e+01 : f32
    %189 = vector.broadcast %cst_56 : f32 to vector<10x1xf32>
    %190 = arith.divf %188, %189 : vector<10x1xf32>
    %191 = vector.broadcast %190 : vector<10x1xf32> to vector<10x32xf32>
    %192 = arith.subf %184, %191 : vector<10x32xf32>
    %193 = arith.mulf %192, %192 : vector<10x32xf32>
    %cst_57 = arith.constant dense<0.000000e+00> : vector<10xf32>
    %194 = vector.multi_reduction <add>, %193, %cst_57 [1] : vector<10x32xf32> to vector<10xf32>
    %195 = vector.shape_cast %194 : vector<10xf32> to vector<10x1xf32>
    %cst_58 = arith.constant 3.200000e+01 : f32
    %196 = vector.broadcast %cst_58 : f32 to vector<10x1xf32>
    %197 = arith.divf %195, %196 : vector<10x1xf32>
    %198 = vector.broadcast %190 : vector<10x1xf32> to vector<10x32xf32>
    %199 = arith.subf %184, %198 : vector<10x32xf32>
    %cst_59 = arith.constant 9.99999997E-7 : f32
    %200 = vector.broadcast %cst_59 : f32 to vector<10x1xf32>
    %201 = arith.addf %197, %200 : vector<10x1xf32>
    %202 = math.rsqrt %201 : vector<10x1xf32>
    %203 = vector.broadcast %202 : vector<10x1xf32> to vector<10x32xf32>
    %204 = arith.mulf %199, %203 : vector<10x32xf32>
    %205 = vector.broadcast %185 : vector<1x32xf32> to vector<10x32xf32>
    %206 = arith.mulf %204, %205 : vector<10x32xf32>
    %207 = vector.broadcast %186 : vector<1x32xf32> to vector<10x32xf32>
    %208 = arith.addf %206, %207 : vector<10x32xf32>
    %c416 = arith.constant 416 : index
    %c0_60 = arith.constant 0 : index
    %209 = vector.load %arg1[%c416, %c0_60] : memref<608x128xbf16, #tpu.memory_space<vmem>>, vector<32x96xbf16>
    %210 = arith.truncf %208 : vector<10x32xf32> to vector<10x32xbf16>
    %cst_61 = arith.constant dense<0.000000e+00> : vector<10x96xf32>
    %211 = tpu.matmul %210, %209, %cst_61 {dimension_numbers = #tpu.dot_dimension_numbers<[1], [0], [0], [1], [0, 0, 1, 1], [], []>} : vector<10x32xbf16>, vector<32x96xbf16>, vector<10x96xf32> -> vector<10x96xf32>
    %c16 = arith.constant 16 : index
    %c0_62 = arith.constant 0 : index
    %212 = vector.load %arg2[%c16, %c0_62] : memref<35x128xf32, #tpu.memory_space<vmem>>, vector<1x96xf32>
    %213 = vector.broadcast %212 : vector<1x96xf32> to vector<10x96xf32>
    %214 = arith.addf %211, %213 : vector<10x96xf32>
    %215 = vector.extract_strided_slice %214 {offsets = [0, 0], sizes = [10, 8], strides = [1, 1]} : vector<10x96xf32> to vector<10x8xf32>
    %216 = vector.extract_strided_slice %214 {offsets = [0, 32], sizes = [10, 8], strides = [1, 1]} : vector<10x96xf32> to vector<10x8xf32>
    %217 = vector.extract_strided_slice %214 {offsets = [0, 64], sizes = [10, 8], strides = [1, 1]} : vector<10x96xf32> to vector<10x8xf32>
    %218 = arith.truncf %215 : vector<10x8xf32> to vector<10x8xbf16>
    %219 = arith.truncf %216 : vector<10x8xf32> to vector<10x8xbf16>
    %cst_63 = arith.constant dense<0.000000e+00> : vector<10x10xf32>
    %220 = tpu.matmul %218, %219, %cst_63 {dimension_numbers = #tpu.dot_dimension_numbers<[1], [1], [0], [0], [0, 0, 1, 0], [], []>} : vector<10x8xbf16>, vector<10x8xbf16>, vector<10x10xf32> -> vector<10x10xf32>
    %221 = arith.addf %220, %16 : vector<10x10xf32>
    %cst_64 = arith.constant dense<0xFF800000> : vector<10xf32>
    %222 = vector.multi_reduction <maximumf>, %221, %cst_64 [1] : vector<10x10xf32> to vector<10xf32>
    %223 = vector.shape_cast %222 : vector<10xf32> to vector<10x1xf32>
    %224 = vector.broadcast %223 : vector<10x1xf32> to vector<10x10xf32>
    %225 = arith.subf %221, %224 : vector<10x10xf32>
    %226 = math.exp %225 : vector<10x10xf32>
    %cst_65 = arith.constant dense<0.000000e+00> : vector<10xf32>
    %227 = vector.multi_reduction <add>, %226, %cst_65 [1] : vector<10x10xf32> to vector<10xf32>
    %228 = vector.shape_cast %227 : vector<10xf32> to vector<10x1xf32>
    %229 = tpu.reciprocal %228 {approx = true} : vector<10x1xf32> -> vector<10x1xf32>
    %230 = arith.truncf %226 : vector<10x10xf32> to vector<10x10xbf16>
    %231 = arith.truncf %217 : vector<10x8xf32> to vector<10x8xbf16>
    %cst_66 = arith.constant dense<0.000000e+00> : vector<10x8xf32>
    %232 = tpu.matmul %230, %231, %cst_66 {dimension_numbers = #tpu.dot_dimension_numbers<[1], [0], [0], [1], [0, 0, 1, 1], [], []>} : vector<10x10xbf16>, vector<10x8xbf16>, vector<10x8xf32> -> vector<10x8xf32>
    %233 = vector.broadcast %229 : vector<10x1xf32> to vector<10x8xf32>
    %234 = arith.mulf %232, %233 : vector<10x8xf32>
    %235 = vector.extract_strided_slice %214 {offsets = [0, 8], sizes = [10, 8], strides = [1, 1]} : vector<10x96xf32> to vector<10x8xf32>
    %236 = vector.extract_strided_slice %214 {offsets = [0, 40], sizes = [10, 8], strides = [1, 1]} : vector<10x96xf32> to vector<10x8xf32>
    %237 = vector.extract_strided_slice %214 {offsets = [0, 72], sizes = [10, 8], strides = [1, 1]} : vector<10x96xf32> to vector<10x8xf32>
    %238 = arith.truncf %235 : vector<10x8xf32> to vector<10x8xbf16>
    %239 = arith.truncf %236 : vector<10x8xf32> to vector<10x8xbf16>
    %cst_67 = arith.constant dense<0.000000e+00> : vector<10x10xf32>
    %240 = tpu.matmul %238, %239, %cst_67 {dimension_numbers = #tpu.dot_dimension_numbers<[1], [1], [0], [0], [0, 0, 1, 0], [], []>} : vector<10x8xbf16>, vector<10x8xbf16>, vector<10x10xf32> -> vector<10x10xf32>
    %241 = arith.addf %240, %16 : vector<10x10xf32>
    %cst_68 = arith.constant dense<0xFF800000> : vector<10xf32>
    %242 = vector.multi_reduction <maximumf>, %241, %cst_68 [1] : vector<10x10xf32> to vector<10xf32>
    %243 = vector.shape_cast %242 : vector<10xf32> to vector<10x1xf32>
    %244 = vector.broadcast %243 : vector<10x1xf32> to vector<10x10xf32>
    %245 = arith.subf %241, %244 : vector<10x10xf32>
    %246 = math.exp %245 : vector<10x10xf32>
    %cst_69 = arith.constant dense<0.000000e+00> : vector<10xf32>
    %247 = vector.multi_reduction <add>, %246, %cst_69 [1] : vector<10x10xf32> to vector<10xf32>
    %248 = vector.shape_cast %247 : vector<10xf32> to vector<10x1xf32>
    %249 = tpu.reciprocal %248 {approx = true} : vector<10x1xf32> -> vector<10x1xf32>
    %250 = arith.truncf %246 : vector<10x10xf32> to vector<10x10xbf16>
    %251 = arith.truncf %237 : vector<10x8xf32> to vector<10x8xbf16>
    %cst_70 = arith.constant dense<0.000000e+00> : vector<10x8xf32>
    %252 = tpu.matmul %250, %251, %cst_70 {dimension_numbers = #tpu.dot_dimension_numbers<[1], [0], [0], [1], [0, 0, 1, 1], [], []>} : vector<10x10xbf16>, vector<10x8xbf16>, vector<10x8xf32> -> vector<10x8xf32>
    %253 = vector.broadcast %249 : vector<10x1xf32> to vector<10x8xf32>
    %254 = arith.mulf %252, %253 : vector<10x8xf32>
    %255 = vector.extract_strided_slice %214 {offsets = [0, 16], sizes = [10, 8], strides = [1, 1]} : vector<10x96xf32> to vector<10x8xf32>
    %256 = vector.extract_strided_slice %214 {offsets = [0, 48], sizes = [10, 8], strides = [1, 1]} : vector<10x96xf32> to vector<10x8xf32>
    %257 = vector.extract_strided_slice %214 {offsets = [0, 80], sizes = [10, 8], strides = [1, 1]} : vector<10x96xf32> to vector<10x8xf32>
    %258 = arith.truncf %255 : vector<10x8xf32> to vector<10x8xbf16>
    %259 = arith.truncf %256 : vector<10x8xf32> to vector<10x8xbf16>
    %cst_71 = arith.constant dense<0.000000e+00> : vector<10x10xf32>
    %260 = tpu.matmul %258, %259, %cst_71 {dimension_numbers = #tpu.dot_dimension_numbers<[1], [1], [0], [0], [0, 0, 1, 0], [], []>} : vector<10x8xbf16>, vector<10x8xbf16>, vector<10x10xf32> -> vector<10x10xf32>
    %261 = arith.addf %260, %16 : vector<10x10xf32>
    %cst_72 = arith.constant dense<0xFF800000> : vector<10xf32>
    %262 = vector.multi_reduction <maximumf>, %261, %cst_72 [1] : vector<10x10xf32> to vector<10xf32>
    %263 = vector.shape_cast %262 : vector<10xf32> to vector<10x1xf32>
    %264 = vector.broadcast %263 : vector<10x1xf32> to vector<10x10xf32>
    %265 = arith.subf %261, %264 : vector<10x10xf32>
    %266 = math.exp %265 : vector<10x10xf32>
    %cst_73 = arith.constant dense<0.000000e+00> : vector<10xf32>
    %267 = vector.multi_reduction <add>, %266, %cst_73 [1] : vector<10x10xf32> to vector<10xf32>
    %268 = vector.shape_cast %267 : vector<10xf32> to vector<10x1xf32>
    %269 = tpu.reciprocal %268 {approx = true} : vector<10x1xf32> -> vector<10x1xf32>
    %270 = arith.truncf %266 : vector<10x10xf32> to vector<10x10xbf16>
    %271 = arith.truncf %257 : vector<10x8xf32> to vector<10x8xbf16>
    %cst_74 = arith.constant dense<0.000000e+00> : vector<10x8xf32>
    %272 = tpu.matmul %270, %271, %cst_74 {dimension_numbers = #tpu.dot_dimension_numbers<[1], [0], [0], [1], [0, 0, 1, 1], [], []>} : vector<10x10xbf16>, vector<10x8xbf16>, vector<10x8xf32> -> vector<10x8xf32>
    %273 = vector.broadcast %269 : vector<10x1xf32> to vector<10x8xf32>
    %274 = arith.mulf %272, %273 : vector<10x8xf32>
    %275 = vector.extract_strided_slice %214 {offsets = [0, 24], sizes = [10, 8], strides = [1, 1]} : vector<10x96xf32> to vector<10x8xf32>
    %276 = vector.extract_strided_slice %214 {offsets = [0, 56], sizes = [10, 8], strides = [1, 1]} : vector<10x96xf32> to vector<10x8xf32>
    %277 = vector.extract_strided_slice %214 {offsets = [0, 88], sizes = [10, 8], strides = [1, 1]} : vector<10x96xf32> to vector<10x8xf32>
    %278 = arith.truncf %275 : vector<10x8xf32> to vector<10x8xbf16>
    %279 = arith.truncf %276 : vector<10x8xf32> to vector<10x8xbf16>
    %cst_75 = arith.constant dense<0.000000e+00> : vector<10x10xf32>
    %280 = tpu.matmul %278, %279, %cst_75 {dimension_numbers = #tpu.dot_dimension_numbers<[1], [1], [0], [0], [0, 0, 1, 0], [], []>} : vector<10x8xbf16>, vector<10x8xbf16>, vector<10x10xf32> -> vector<10x10xf32>
    %281 = arith.addf %280, %16 : vector<10x10xf32>
    %cst_76 = arith.constant dense<0xFF800000> : vector<10xf32>
    %282 = vector.multi_reduction <maximumf>, %281, %cst_76 [1] : vector<10x10xf32> to vector<10xf32>
    %283 = vector.shape_cast %282 : vector<10xf32> to vector<10x1xf32>
    %284 = vector.broadcast %283 : vector<10x1xf32> to vector<10x10xf32>
    %285 = arith.subf %281, %284 : vector<10x10xf32>
    %286 = math.exp %285 : vector<10x10xf32>
    %cst_77 = arith.constant dense<0.000000e+00> : vector<10xf32>
    %287 = vector.multi_reduction <add>, %286, %cst_77 [1] : vector<10x10xf32> to vector<10xf32>
    %288 = vector.shape_cast %287 : vector<10xf32> to vector<10x1xf32>
    %289 = tpu.reciprocal %288 {approx = true} : vector<10x1xf32> -> vector<10x1xf32>
    %290 = arith.truncf %286 : vector<10x10xf32> to vector<10x10xbf16>
    %291 = arith.truncf %277 : vector<10x8xf32> to vector<10x8xbf16>
    %cst_78 = arith.constant dense<0.000000e+00> : vector<10x8xf32>
    %292 = tpu.matmul %290, %291, %cst_78 {dimension_numbers = #tpu.dot_dimension_numbers<[1], [0], [0], [1], [0, 0, 1, 1], [], []>} : vector<10x10xbf16>, vector<10x8xbf16>, vector<10x8xf32> -> vector<10x8xf32>
    %293 = vector.broadcast %289 : vector<10x1xf32> to vector<10x8xf32>
    %294 = arith.mulf %292, %293 : vector<10x8xf32>
    %295 = tpu.concatenate %234, %254, %274, %294 in 1 : vector<10x8xf32>, vector<10x8xf32>, vector<10x8xf32>, vector<10x8xf32> -> vector<10x32xf32>
    %c448 = arith.constant 448 : index
    %c0_79 = arith.constant 0 : index
    %296 = vector.load %arg1[%c448, %c0_79] : memref<608x128xbf16, #tpu.memory_space<vmem>>, vector<32x32xbf16>
    %297 = arith.truncf %295 : vector<10x32xf32> to vector<10x32xbf16>
    %cst_80 = arith.constant dense<0.000000e+00> : vector<10x32xf32>
    %298 = tpu.matmul %297, %296, %cst_80 {dimension_numbers = #tpu.dot_dimension_numbers<[1], [0], [0], [1], [0, 0, 1, 1], [], []>} : vector<10x32xbf16>, vector<32x32xbf16>, vector<10x32xf32> -> vector<10x32xf32>
    %299 = arith.addf %184, %298 : vector<10x32xf32>
    %c17 = arith.constant 17 : index
    %c0_81 = arith.constant 0 : index
    %300 = vector.load %arg2[%c17, %c0_81] : memref<35x128xf32, #tpu.memory_space<vmem>>, vector<1x32xf32>
    %301 = vector.broadcast %300 : vector<1x32xf32> to vector<10x32xf32>
    %302 = arith.addf %299, %301 : vector<10x32xf32>
    %c18 = arith.constant 18 : index
    %c0_82 = arith.constant 0 : index
    %303 = vector.load %arg2[%c18, %c0_82] : memref<35x128xf32, #tpu.memory_space<vmem>>, vector<1x32xf32>
    %c19 = arith.constant 19 : index
    %c0_83 = arith.constant 0 : index
    %304 = vector.load %arg2[%c19, %c0_83] : memref<35x128xf32, #tpu.memory_space<vmem>>, vector<1x32xf32>
    %cst_84 = arith.constant dense<0.000000e+00> : vector<10xf32>
    %305 = vector.multi_reduction <add>, %302, %cst_84 [1] : vector<10x32xf32> to vector<10xf32>
    %306 = vector.shape_cast %305 : vector<10xf32> to vector<10x1xf32>
    %cst_85 = arith.constant 3.200000e+01 : f32
    %307 = vector.broadcast %cst_85 : f32 to vector<10x1xf32>
    %308 = arith.divf %306, %307 : vector<10x1xf32>
    %309 = vector.broadcast %308 : vector<10x1xf32> to vector<10x32xf32>
    %310 = arith.subf %302, %309 : vector<10x32xf32>
    %311 = arith.mulf %310, %310 : vector<10x32xf32>
    %cst_86 = arith.constant dense<0.000000e+00> : vector<10xf32>
    %312 = vector.multi_reduction <add>, %311, %cst_86 [1] : vector<10x32xf32> to vector<10xf32>
    %313 = vector.shape_cast %312 : vector<10xf32> to vector<10x1xf32>
    %cst_87 = arith.constant 3.200000e+01 : f32
    %314 = vector.broadcast %cst_87 : f32 to vector<10x1xf32>
    %315 = arith.divf %313, %314 : vector<10x1xf32>
    %316 = vector.broadcast %308 : vector<10x1xf32> to vector<10x32xf32>
    %317 = arith.subf %302, %316 : vector<10x32xf32>
    %cst_88 = arith.constant 9.99999997E-7 : f32
    %318 = vector.broadcast %cst_88 : f32 to vector<10x1xf32>
    %319 = arith.addf %315, %318 : vector<10x1xf32>
    %320 = math.rsqrt %319 : vector<10x1xf32>
    %321 = vector.broadcast %320 : vector<10x1xf32> to vector<10x32xf32>
    %322 = arith.mulf %317, %321 : vector<10x32xf32>
    %323 = vector.broadcast %303 : vector<1x32xf32> to vector<10x32xf32>
    %324 = arith.mulf %322, %323 : vector<10x32xf32>
    %325 = vector.broadcast %304 : vector<1x32xf32> to vector<10x32xf32>
    %326 = arith.addf %324, %325 : vector<10x32xf32>
    %c480 = arith.constant 480 : index
    %c0_89 = arith.constant 0 : index
    %327 = vector.load %arg1[%c480, %c0_89] : memref<608x128xbf16, #tpu.memory_space<vmem>>, vector<32x64xbf16>
    %328 = arith.truncf %326 : vector<10x32xf32> to vector<10x32xbf16>
    %cst_90 = arith.constant dense<0.000000e+00> : vector<10x64xf32>
    %329 = tpu.matmul %328, %327, %cst_90 {dimension_numbers = #tpu.dot_dimension_numbers<[1], [0], [0], [1], [0, 0, 1, 1], [], []>} : vector<10x32xbf16>, vector<32x64xbf16>, vector<10x64xf32> -> vector<10x64xf32>
    %c20 = arith.constant 20 : index
    %c0_91 = arith.constant 0 : index
    %330 = vector.load %arg2[%c20, %c0_91] : memref<35x128xf32, #tpu.memory_space<vmem>>, vector<1x64xf32>
    %331 = vector.broadcast %330 : vector<1x64xf32> to vector<10x64xf32>
    %332 = arith.addf %329, %331 : vector<10x64xf32>
    %cst_92 = arith.constant 5.000000e-01 : f32
    %333 = vector.broadcast %cst_92 : f32 to vector<10x64xf32>
    %334 = arith.mulf %333, %332 : vector<10x64xf32>
    %cst_93 = arith.constant 4.471500e-02 : f32
    %335 = vector.broadcast %cst_93 : f32 to vector<10x64xf32>
    %336 = arith.mulf %335, %332 : vector<10x64xf32>
    %337 = arith.mulf %336, %332 : vector<10x64xf32>
    %338 = arith.mulf %337, %332 : vector<10x64xf32>
    %339 = arith.addf %332, %338 : vector<10x64xf32>
    %cst_94 = arith.constant 0.797884583 : f32
    %340 = vector.broadcast %cst_94 : f32 to vector<10x64xf32>
    %341 = arith.mulf %340, %339 : vector<10x64xf32>
    %342 = math.tanh %341 : vector<10x64xf32>
    %cst_95 = arith.constant 1.000000e+00 : f32
    %343 = vector.broadcast %cst_95 : f32 to vector<10x64xf32>
    %344 = arith.addf %343, %342 : vector<10x64xf32>
    %345 = arith.mulf %334, %344 : vector<10x64xf32>
    %c512 = arith.constant 512 : index
    %c0_96 = arith.constant 0 : index
    %346 = vector.load %arg1[%c512, %c0_96] : memref<608x128xbf16, #tpu.memory_space<vmem>>, vector<64x32xbf16>
    %347 = arith.truncf %345 : vector<10x64xf32> to vector<10x64xbf16>
    %cst_97 = arith.constant dense<0.000000e+00> : vector<10x32xf32>
    %348 = tpu.matmul %347, %346, %cst_97 {dimension_numbers = #tpu.dot_dimension_numbers<[1], [0], [0], [1], [0, 0, 1, 1], [], []>} : vector<10x64xbf16>, vector<64x32xbf16>, vector<10x32xf32> -> vector<10x32xf32>
    %349 = arith.addf %302, %348 : vector<10x32xf32>
    %c21 = arith.constant 21 : index
    %c0_98 = arith.constant 0 : index
    %350 = vector.load %arg2[%c21, %c0_98] : memref<35x128xf32, #tpu.memory_space<vmem>>, vector<1x32xf32>
    %351 = vector.broadcast %350 : vector<1x32xf32> to vector<10x32xf32>
    %352 = arith.addf %349, %351 : vector<10x32xf32>
    %c22 = arith.constant 22 : index
    %c0_99 = arith.constant 0 : index
    %353 = vector.load %arg2[%c22, %c0_99] : memref<35x128xf32, #tpu.memory_space<vmem>>, vector<1x32xf32>
    %c23 = arith.constant 23 : index
    %c0_100 = arith.constant 0 : index
    %354 = vector.load %arg2[%c23, %c0_100] : memref<35x128xf32, #tpu.memory_space<vmem>>, vector<1x32xf32>
    %cst_101 = arith.constant dense<0.000000e+00> : vector<10xf32>
    %355 = vector.multi_reduction <add>, %352, %cst_101 [1] : vector<10x32xf32> to vector<10xf32>
    %356 = vector.shape_cast %355 : vector<10xf32> to vector<10x1xf32>
    %cst_102 = arith.constant 3.200000e+01 : f32
    %357 = vector.broadcast %cst_102 : f32 to vector<10x1xf32>
    %358 = arith.divf %356, %357 : vector<10x1xf32>
    %359 = vector.broadcast %358 : vector<10x1xf32> to vector<10x32xf32>
    %360 = arith.subf %352, %359 : vector<10x32xf32>
    %361 = arith.mulf %360, %360 : vector<10x32xf32>
    %cst_103 = arith.constant dense<0.000000e+00> : vector<10xf32>
    %362 = vector.multi_reduction <add>, %361, %cst_103 [1] : vector<10x32xf32> to vector<10xf32>
    %363 = vector.shape_cast %362 : vector<10xf32> to vector<10x1xf32>
    %cst_104 = arith.constant 3.200000e+01 : f32
    %364 = vector.broadcast %cst_104 : f32 to vector<10x1xf32>
    %365 = arith.divf %363, %364 : vector<10x1xf32>
    %366 = vector.broadcast %358 : vector<10x1xf32> to vector<10x32xf32>
    %367 = arith.subf %352, %366 : vector<10x32xf32>
    %cst_105 = arith.constant 9.99999997E-7 : f32
    %368 = vector.broadcast %cst_105 : f32 to vector<10x1xf32>
    %369 = arith.addf %365, %368 : vector<10x1xf32>
    %370 = math.rsqrt %369 : vector<10x1xf32>
    %371 = vector.broadcast %370 : vector<10x1xf32> to vector<10x32xf32>
    %372 = arith.mulf %367, %371 : vector<10x32xf32>
    %373 = vector.broadcast %353 : vector<1x32xf32> to vector<10x32xf32>
    %374 = arith.mulf %372, %373 : vector<10x32xf32>
    %375 = vector.broadcast %354 : vector<1x32xf32> to vector<10x32xf32>
    %376 = arith.addf %374, %375 : vector<10x32xf32>
    %377 = vector.extract_strided_slice %376 {offsets = [0, 0], sizes = [1, 32], strides = [1, 1]} : vector<10x32xf32> to vector<1x32xf32>
    %378 = vector.extract_strided_slice %376 {offsets = [5, 0], sizes = [1, 32], strides = [1, 1]} : vector<10x32xf32> to vector<1x32xf32>
    %379 = tpu.concatenate %377, %378 in 0 : vector<1x32xf32>, vector<1x32xf32> -> vector<2x32xf32>
    %c576 = arith.constant 576 : index
    %c0_106 = arith.constant 0 : index
    %380 = vector.load %arg1[%c576, %c0_106] : memref<608x128xbf16, #tpu.memory_space<vmem>>, vector<32x5xbf16>
    %381 = arith.truncf %379 : vector<2x32xf32> to vector<2x32xbf16>
    %cst_107 = arith.constant dense<0.000000e+00> : vector<2x5xf32>
    %382 = tpu.matmul %381, %380, %cst_107 {dimension_numbers = #tpu.dot_dimension_numbers<[1], [0], [0], [1], [0, 0, 1, 1], [], []>} : vector<2x32xbf16>, vector<32x5xbf16>, vector<2x5xf32> -> vector<2x5xf32>
    %c24 = arith.constant 24 : index
    %c0_108 = arith.constant 0 : index
    %383 = vector.load %arg2[%c24, %c0_108] : memref<35x128xf32, #tpu.memory_space<vmem>>, vector<1x5xf32>
    %384 = vector.broadcast %383 : vector<1x5xf32> to vector<2x5xf32>
    %385 = arith.addf %382, %384 : vector<2x5xf32>
    %c0_109 = arith.constant 0 : index
    %c0_110 = arith.constant 0 : index
    %386 = vector.load %arg3[%c0_109, %c0_110] : memref<2x5xf32, #tpu.memory_space<vmem>>, vector<2x5xf32>
    tpu.vector_store %arg3[%c0_109, %c0_110], %385 {strides = array<i32>} : memref<2x5xf32, #tpu.memory_space<vmem>>, vector<2x5xf32>,
    return
  }
}

</mosaic_0001>

<bundles_post_ra>
// kernel: forward.1
= control target key start
LH: loop header
LB: loop body
LE: loop exit
PB: predicated region body
PF: predicated region fallthrough
CT: control target
= control target key end

     0   :  { %s3258_s0 = inlined_call_operand.vmem [shape: bf16[8,256], index: 0, kind: input, shape index: {}]   ;;  %s3259_s1 = inlined_call_operand.vmem [shape: bf16[608,128], index: 1, kind: input, shape index: {}]   ;;  %s3260_s2 = inlined_call_operand.vmem [shape: f32[35,128], index: 2, kind: input, shape index: {}]   ;;  %s3261_s3 = inlined_call_operand.hbm [shape: f32[2,5], index: 3, kind: output, shape index: {}]  }
   0x1   :  { %v2546_v0 = vld [vmem:[%s3259_s1 + $0x40] sm:$0xff]   ;;  %v2548_v2 = vld [vmem:[%s3259_s1 + $0x48] sm:$0xff]   ;;  %v2550_v4 = vld [vmem:[%s3259_s1 + $0x50] sm:$0xff]  }
   0x2   :  { %v2547_v1 = vld [vmem:[%s3259_s1] sm:$0xff]   ;;  %2238 = vmatprep.subr.bf16.mxu0 %v2546_v0  ;;  %v2549_v3 = vld [vmem:[%s3259_s1 + $0x8] sm:$0xff]   ;;  %v2551_v5 = vld [vmem:[%s3259_s1 + $0x10] sm:$0xff]  }
   0x3   :  { %2239 = vmatpush3.bf16.msra.mxu0 %v2547_v1  ;;  %v2552_v6 = vld [vmem:[%s3259_s1 + $0x58] sm:$0xff]   ;;  %v2554_v8 = vld [vmem:[%s3259_s1 + $0x60] sm:$0xff]   ;;  %v2556_v10 = vld [vmem:[%s3259_s1 + $0x68] sm:$0xff]  }
   0x4   :  { %2240 = vmatprep.subr.bf16.mxu0 %v2548_v2  ;;  %v2553_v7 = vld [vmem:[%s3259_s1 + $0x18] sm:$0xff]   ;;  %v2555_v9 = vld [vmem:[%s3259_s1 + $0x20] sm:$0xff]   ;;  %v2557_v12 = vld [vmem:[%s3259_s1 + $0x28] sm:$0xff]  }
   0x5   :  { %v16_v11 = vld [vmem:[%s3258_s0] sm:$0xff]  ;;  %v2558_v14 = vld [vmem:[%s3259_s1 + $0x70] sm:$0xff]   ;;  %v2560_v16 = vld [vmem:[%s3259_s1 + $0x78] sm:$0xff]  }
   0x6   :  { %v2155_v13 = vcombine.high %v16_v11, %v16_v11  ;;  %v2559_v15 = vld [vmem:[%s3259_s1 + $0x30] sm:$0xff]   ;;  %v2561_v17 = vld [vmem:[%s3259_s1 + $0x38] sm:$0xff]   ;;  %v2154_v18 = vcombine.low %v16_v11, %v16_v11 }
   0x7   :  { %2241 = vmatpush3.bf16.msra.mxu0 %v2549_v3 }
   0x8   :  { %2242 = vmatprep.subr.bf16.mxu0 %v2550_v4  ;;  %189 = vmatprep.mubr.bf16.mxu0 %v2155_v13 }
   0xb   :  { %2243 = vmatpush3.bf16.msra.mxu0 %v2551_v5 }
   0xc   :  { %2244 = vmatprep.subr.bf16.mxu0 %v2552_v6 }
   0xf   :  { %2245 = vmatpush3.bf16.msra.mxu0 %v2553_v7 }
  0x10   :  { %2246 = vmatprep.subr.bf16.mxu0 %v2554_v8 }
  0x13   :  { %2247 = vmatpush3.bf16.msra.mxu0 %v2555_v9 }
  0x14   :  { %2248 = vmatprep.subr.bf16.mxu0 %v2556_v10 }
  0x17   :  { %2249 = vmatpush3.bf16.msra.mxu0 %v2557_v12 }
  0x18   :  { %2250 = vmatprep.subr.bf16.mxu0 %v2558_v14 }
  0x1b   :  { %2251 = vmatpush3.bf16.msra.mxu0 %v2559_v15 }
  0x1c   :  { %2252 = vmatprep.subr.bf16.mxu0 %v2560_v16 }
  0x1f   :  { %2253 = vmatpush3.bf16.msra.mxu0 %v2561_v17 }
  0x20   :  { %8 = vsyncpa [#allocation3], 0  ;;  %v197_v19 = vld [vmem:[%s3260_s2 + $0x1] sm:$0x1f]  ;;  %v2153_v21 = vld [vmem:[%s3260_s2] ss:$0 sm:$0xff] }
  0x21   :  { %v199_v24 = vrot.slane %v197_v19, 1  ;;  %v202_v25 = vrot.slane %v197_v19, 5  ;;  %v208_v31 = vrot.slane %v197_v19, 3  ;;  %vm213_vm0 = vcmask 1040384   ;;  %v2564_v49 = vld [vmem:[%s3259_s1 + $0x80] sm:$0xff]   ;;  %v2565_v51 = vld [vmem:[%s3259_s1 + $0x88] sm:$0xff]  }
  0x22   :  { %190 = vmatmul.mubr.bf16.vlgmr.msra.gmra.mrb[0].mxu0 %v2154_v18  ;;  %vm215_vm1 = vcmask 1044480   ;;  %vm217_vm2 = vcmask 1045504   ;;  %vm223_vm3 = vcmask 261120   ;;  %vm227_vm4 = vcmask 254976   ;;  %v2172_v60 = vld [vmem:[%s3260_s2 + $0x6] ss:$0 sm:$0xff] }
  0x23   :  { %v2700_v50 = vmov 0.0   ;;  %vm2701_vm5 = vmmov 0   ;;  %v2173_v0 = vld [vmem:[%s3260_s2 + $0x7] ss:$0 sm:$0xff]  ;;  %v2174_v5 = vld [vmem:[%s3260_s2 + $0x8] ss:$0 sm:$0xff] }
  0x24   :  { %2323 = vmatprep.subr.bf16.mxu1 %v2700_v50  ;;  %2349 = vmatprep.subr.bf16.mxu0 %v2700_v50  ;;  %s2702_s5 = smov 96   ;;  %s2703_s6 = smov 88   ;;  %vm334_vm6 = vcmask 64512   ;;  %v2854_v15 = vld [vmem:[%s3260_s2 + $0x19] sm:$0xff]  ;;  %v2859_v17 = vld [vmem:[%s3260_s2 + $0x21] sm:$0x3] }
  0x25   :  { %2324 = vmatpush3.bf16.msra.mxu1 %v2564_v49  ;;  %2327 = vmatprep.mubr.msk.bf16.mxu1 %vm2701_vm5, %v2700_v50  ;;  %s2704_s7 = smov 80   ;;  %s2705_s8 = smov 72   ;;  %vm382_vm7 = vcmask 80896   ;;  %vm386_vm8 = vcmask 74752   ;;  %vm851_vm9 = vcmask 130048   ;;  %vm854_vm10 = vcmask 195584  }
  0x26   :  { %2325 = vmatprep.subr.bf16.mxu1 %v2700_v50  ;;  %2351 = vmatprep.mubr.msk.bf16.mxu0 %vm2701_vm5, %v2700_v50  ;;  %s2706_s13 = smov 64   ;;  %s2707_s14 = smov 120   ;;  %vm1084_vm11 = vcmask 523264   ;;  %vm2137_vm12 = vcmask 33792  }
  0x27   :  { %s2708_s15 = smov 112   ;;  %s2709_s16 = smov 104  }
  0x28   :  { %s2710_s0 = smov 48   ;;  %s2711_s17 = smov 56  }
  0x29   :  { %2326 = vmatpush3.bf16.msra.mxu1 %v2565_v51  ;;  %s2712_s18 = smov 40   ;;  %s2713_s21 = smov 8  }
  0x2a   :  { %2331 = vmatprep.subr.bf16.mxu1 %v2700_v50  ;;  %s2714_s22 = smov 16   ;;  %s2715_s25 = smov 24  }
  0xf5   :  { %v2254_v20 = vpop.f32.mrb[0].mxu0 }
  0xf6   :  { %v2255_v22 = vpop.f32.mrb[1].mxu0 }
  0xf7   :  { %v2256_v23 = vadd.f32 %v2255_v22, %v2254_v20  ;;  %v2257_v26 = vpop.f32.mrb[2].mxu0 }
  0xf8   :  { %v2258_v27 = vpop.f32.mrb[3].mxu0 }
  0xf9   :  { %v192_v28 = vadd.f32 %v2256_v23, %v2153_v21 }
  0xfb   :  { %v201_v29 = vadd.f32 %v199_v24, %v192_v28  ;;  %v204_v30 = vadd.f32 %v202_v25, %v192_v28 }
  0xfd   :  { %v206_v32 = vrot.slane %v201_v29, 7  ;;  %v2794_v33 = vrot.slane %v204_v30, 6 }
  0xff   :  { %v214_v34 = vsel %vm213_vm0, %v197_v19, %v206_v32  ;;  %v228_v38 = vsel %vm227_vm4, %v2794_v33, 0.0 }
 0x100   :  { %v216_v35 = vsel %vm215_vm1, %v214_v34, %v208_v31 }
 0x101   :  { %v2799_v36 = vsel %vm217_vm2, %v216_v35, %v2794_v33 }
 0x102   :  { %v224_v37 = vsel %vm223_vm3, %v2799_v36, 0.0 }
 0x103   :  { %225 = vadd.xlane.f32.xlu0 %v224_v37 }
 0x107   :  { %229 = vadd.xlane.f32.xlu0 %v228_v38 }
 0x190   :  { %v226_v39 = vpop.xlane.xlu0 %225 }
 0x191   :  { %v232_v40 = vmul.f32 0.03125, %v226_v39 }
 0x193   :  { %v234_v41 = vsub.f32 %v2799_v36, %v232_v40 }
 0x194   :  { %v230_v42 = vpop.xlane.xlu0 %229 }
 0x195   :  { %v233_v43 = vmul.f32 0.03125, %v230_v42  ;;  %v236_v44 = vmul.f32 %v234_v41, %v234_v41 }
 0x197   :  { %v235_v45 = vsub.f32 %v2794_v33, %v233_v43  ;;  %v238_v46 = vsel %vm223_vm3, %v236_v44, 0.0 }
 0x198   :  { %239 = vadd.xlane.f32.xlu1 %v238_v46 }
 0x199   :  { %v237_v47 = vmul.f32 %v235_v45, %v235_v45 }
 0x19b   :  { %v241_v48 = vsel %vm227_vm4, %v237_v47, 0.0 }
 0x19c   :  { %242 = vadd.xlane.f32.xlu1 %v241_v48 }
 0x225   :  { %v240_v52 = vpop.xlane.xlu1 %239 }
 0x226   :  { %v244_v53 = vmul.f32 0.03125, %v240_v52 }
 0x228   :  { %v246_v54 = vadd.f32 1e-06, %v244_v53 }
 0x229   :  { %v243_v55 = vpop.xlane.xlu1 %242 }
 0x22a   :  { %2586 = vrsqrt.f32 %v246_v54  ;;  %v245_v56 = vmul.f32 0.03125, %v243_v55 }
 0x22c   :  { %v247_v57 = vadd.f32 1e-06, %v245_v56 }
 0x22e   :  { %2588 = vrsqrt.f32 %v247_v57 }
 0x234   :  { %v2587_v58 = vpop.eup %2586 }
 0x235   :  { %v250_v59 = vmul.f32 %v2587_v58, %v234_v41 }
 0x237   :  { %v256_v63 = vmul.f32 %v2172_v60, %v250_v59 }
 0x238   :  { %v2589_v61 = vpop.eup %2588 }
 0x239   :  { %v251_v62 = vmul.f32 %v2589_v61, %v235_v45  ;;  %v262_v2 = vadd.f32 %v2173_v0, %v256_v63 }
 0x23b   :  { %v257_v1 = vmul.f32 %v2172_v60, %v251_v62 }
 0x23d   :  { %v263_v3 = vadd.f32 %v2173_v0, %v257_v1 }
 0x23f   :  { %v268_v4 = vpack.c.bf16 %v263_v3, %v262_v2 }
 0x241   :  { %2328 = vmatmul.mubr.msk.bf16.vlgmr.msra.gmra.mrb[0].mxu1 %vm223_vm3, %v268_v4 }
 0x242   :  { %2333 = vmatprep.mubr.msk.bf16.mxu1 %vm2701_vm5, %v2700_v50 }
 0x314   :  { %v323_v6 = vpop.f32.mrb[0].mxu1 }
 0x315   :  { %v2329_v7 = vpop.f32.mrb[1].mxu1  ;;  %v324_v9 = vadd.f32 %v2174_v5, %v323_v6 }
 0x316   :  { %v326_v8 = vpop.f32.mrb[2].mxu1 }
 0x317   :  { %v327_v10 = vadd.f32 %v2174_v5, %v326_v8  ;;  %v2330_v11 = vpop.f32.mrb[3].mxu1 }
 0x319   :  { %v2835_v12 = vpack.c.bf16 %v327_v10, %v324_v9 }
 0x31b   :  { %332 = vrot.lane.b32.xlu0 %v2835_v12, %s2702_s5 }
 0x31f   :  { %458 = vrot.lane.b32.xlu0 %v2835_v12, %s2703_s6 }
 0x323   :  { %581 = vrot.lane.b32.xlu0 %v2835_v12, %s2704_s7 }
 0x327   :  { %704 = vrot.lane.b32.xlu0 %v2835_v12, %s2705_s8 }
 0x38d   :  { %v333_v13 = vpop.permute.xlu0 %332 }
 0x38e   :  { %v339_v14 = vsel %vm334_vm6, %v333_v13, 0 }
 0x38f   :  { %2332 = vmatpush3.bf16.xpose.msra.mxu1 %v339_v14 }
 0x390   :  { %2337 = vmatprep.subr.bf16.mxu1 %v2700_v50 }
 0x391   :  { %v459_v37 = vpop.permute.xlu0 %458 }
 0x392   :  { %v464_v39 = vsel %vm334_vm6, %v459_v37, 0 }
 0x395   :  { %v582_v40 = vpop.permute.xlu0 %581 }
 0x396   :  { %2334 = vmatmul.mubr.msk.bf16.vlgmr.msra.gmra.mrb[4].mxu1 %vm334_vm6, %v2835_v12  ;;  %v587_v42 = vsel %vm334_vm6, %v582_v40, 0 }
 0x397   :  { %2339 = vmatprep.mubr.msk.bf16.mxu1 %vm2701_vm5, %v2700_v50 }
 0x399   :  { %v705_v43 = vpop.permute.xlu0 %704 }
 0x39a   :  { %v710_v45 = vsel %vm334_vm6, %v705_v43, 0 }
 0x469   :  { %v375_v16 = vpop.f32.mrb[4].mxu1 }
 0x46a   :  { %v376_v18 = vadd.f32 %v375_v16, %v2854_v15  ;;  %v2335_v19 = vpop.f32.mrb[5].mxu1 }
 0x46b   :  { %v378_v20 = vpop.f32.mrb[6].mxu1 }
 0x46c   :  { %v379_v21 = vadd.f32 %v378_v20, %v2859_v17  ;;  %v2336_v22 = vpop.f32.mrb[7].mxu1  ;;  %v383_v23 = vsel %vm382_vm7, %v376_v18, -inf }
 0x46d   :  { %384 = vmax.xlane.f32.xlu1 %v383_v23 }
 0x46e   :  { %v387_v24 = vsel %vm386_vm8, %v379_v21, -inf }
 0x471   :  { %388 = vmax.xlane.f32.xlu1 %v387_v24 }
 0x482   :  { %405 = vrot.lane.b32.xlu1 %v2835_v12, %s2706_s13 }
 0x486   :  { %456 = vrot.lane.b32.xlu1 %v2835_v12, %s2707_s14 }
 0x48a   :  { %579 = vrot.lane.b32.xlu1 %v2835_v12, %s2708_s15 }
 0x48e   :  { %702 = vrot.lane.b32.xlu1 %v2835_v12, %s2709_s16 }
 0x4fa   :  { %v385_v25 = vpop.xlane.xlu1 %384 }
 0x4fb   :  { %v390_v26 = vsub.f32 %v376_v18, %v385_v25 }
 0x4fd   :  { %v392_v27 = vmul.f32 1.442695, %v390_v26 }
 0x4fe   :  { %v389_v28 = vpop.xlane.xlu1 %388 }
 0x4ff   :  { %v391_v29 = vsub.f32 %v379_v21, %v389_v28  ;;  %2590 = vpow2.f32 %v392_v27 }
 0x501   :  { %v394_v30 = vmul.f32 1.442695, %v391_v29 }
 0x502   :  { %v406_v31 = vpop.permute.xlu1 %405 }
 0x503   :  { %2592 = vpow2.f32 %v394_v30  ;;  %v411_v32 = vsel %vm215_vm1, %v406_v31, 0 }
 0x504   :  { %2338 = vmatpush3.bf16.msra.mxu1 %v411_v32 }
 0x505   :  { %2343 = vmatprep.subr.bf16.mxu1 %v2700_v50 }
 0x506   :  { %v457_v41 = vpop.permute.xlu1 %456 }
 0x509   :  { %v2875_v34 = vpop.eup %2590 }
 0x50a   :  { %v580_v44 = vpop.permute.xlu1 %579 }
 0x50d   :  { %v2877_v35 = vpop.eup %2592 }
 0x50e   :  { %v404_v38 = vpack.c.bf16 %v2877_v35, %v2875_v34  ;;  %v703_v46 = vpop.permute.xlu1 %702 }
 0x510   :  { %2340 = vmatmul.mubr.msk.bf16.vlgmr.msra.gmra.mrb[8].mxu1 %vm382_vm7, %v404_v38 }
 0x511   :  { %2344 = vmatpush3.bf16.xpose.msra.mxu1 %v464_v39  ;;  %2345 = vmatprep.mubr.msk.bf16.mxu1 %vm2701_vm5, %v2700_v50 }
 0x512   :  { %2355 = vmatprep.subr.bf16.mxu1 %v2700_v50 }
 0x518   :  { %2346 = vmatmul.mubr.msk.bf16.vlgmr.msra.gmra.mrb[12].mxu1 %vm334_vm6, %v457_v41 }
 0x519   :  { %2356 = vmatpush3.bf16.xpose.msra.mxu1 %v587_v42  ;;  %2357 = vmatprep.mubr.msk.bf16.mxu1 %vm2701_vm5, %v2700_v50 }
 0x51a   :  { %2367 = vmatprep.subr.bf16.mxu1 %v2700_v50 }
 0x520   :  { %2358 = vmatmul.mubr.msk.bf16.vlgmr.msra.gmra.mrb[16].mxu1 %vm334_vm6, %v580_v44 }
 0x521   :  { %2368 = vmatpush3.bf16.xpose.msra.mxu1 %v710_v45  ;;  %2369 = vmatprep.mubr.msk.bf16.mxu1 %vm2701_vm5, %v2700_v50 }
 0x522   :  { %2379 = vmatprep.subr.bf16.mxu1 %v2700_v50 }
 0x528   :  { %2370 = vmatmul.mubr.msk.bf16.vlgmr.msra.gmra.mrb[20].mxu1 %vm334_vm6, %v703_v46 }
 0x529   :  { %2383 = vmatprep.mubr.msk.bf16.mxu1 %vm2701_vm5, %v2700_v50 }
 0x5e3   :  { %v2899_v47 = vpop.f32.mrb[8].mxu1 }
 0x5e4   :  { %v2341_v48 = vpop.f32.mrb[9].mxu1 }
 0x5e5   :  { %v2901_v49 = vpop.f32.mrb[10].mxu1 }
 0x5e6   :  { %v2342_v51 = vpop.f32.mrb[11].mxu1 }
 0x5eb   :  { %v500_v52 = vpop.f32.mrb[12].mxu1 }
 0x5ec   :  { %v501_v53 = vadd.f32 %v500_v52, %v2854_v15  ;;  %v2347_v54 = vpop.f32.mrb[13].mxu1  ;;  %v396_v52 = vsel %vm382_vm7, %v2875_v34, 0.0  ;;  %v399_v34 = vsel %vm386_vm8, %v2877_v35, 0.0  ;;  %v2566_v35 = vld [vmem:[%s3259_s1 + $0x90] sm:$0xff]  }
 0x5ed   :  { %v503_v55 = vpop.f32.mrb[14].mxu1  ;;  %2380 = vmatpush3.bf16.msra.mxu1 %v2566_v35 }
 0x5ee   :  { %v504_v56 = vadd.f32 %v503_v55, %v2859_v17  ;;  %v2348_v57 = vpop.f32.mrb[15].mxu1  ;;  %v507_v58 = vsel %vm382_vm7, %v501_v53, -inf  ;;  %2381 = vmatprep.subr.bf16.mxu1 %v2700_v50 }
 0x5ef   :  { %508 = vmax.xlane.f32.xlu0 %v507_v58 }
 0x5f0   :  { %v510_v59 = vsel %vm386_vm8, %v504_v56, -inf }
 0x5f1   :  { %511 = vmax.xlane.f32.xlu1 %v510_v59 }
 0x5f3   :  { %v623_v60 = vpop.f32.mrb[16].mxu1 }
 0x5f4   :  { %v624_v61 = vadd.f32 %v623_v60, %v2854_v15  ;;  %v2359_v62 = vpop.f32.mrb[17].mxu1 }
 0x5f5   :  { %v626_v63 = vpop.f32.mrb[18].mxu1 }
 0x5f6   :  { %v627_v0 = vadd.f32 %v626_v63, %v2859_v17  ;;  %v2360_v1 = vpop.f32.mrb[19].mxu1  ;;  %v630_v2 = vsel %vm382_vm7, %v624_v61, -inf }
 0x5f7   :  { %631 = vmax.xlane.f32.xlu0 %v630_v2 }
 0x5f8   :  { %v633_v3 = vsel %vm386_vm8, %v627_v0, -inf }
 0x5fb   :  { %634 = vmax.xlane.f32.xlu0 %v633_v3  ;;  %v746_v4 = vpop.f32.mrb[20].mxu1 }
 0x5fc   :  { %v747_v5 = vadd.f32 %v746_v4, %v2854_v15  ;;  %v2371_v6 = vpop.f32.mrb[21].mxu1 }
 0x5fd   :  { %v749_v7 = vpop.f32.mrb[22].mxu1 }
 0x5fe   :  { %v2372_v8 = vpop.f32.mrb[23].mxu1  ;;  %v753_v9 = vsel %vm382_vm7, %v747_v5, -inf  ;;  %v750_v10 = vadd.f32 %v749_v7, %v2859_v17 }
 0x5ff   :  { %754 = vmax.xlane.f32.xlu0 %v753_v9 }
 0x600   :  { %v756_v11 = vsel %vm386_vm8, %v750_v10, -inf }
 0x602   :  { %651 = vrot.lane.b32.xlu1 %v2835_v12, %s2710_s0 }
 0x615   :  { %528 = vrot.lane.b32.xlu0 %v2835_v12, %s2711_s17 }
 0x626   :  { %757 = vmax.xlane.f32.xlu1 %v756_v11 }
 0x637   :  { %774 = vrot.lane.b32.xlu1 %v2835_v12, %s2712_s18 }
 0x67c   :  { %v509_v13 = vpop.xlane.xlu0 %508 }
 0x67d   :  { %v513_v14 = vsub.f32 %v501_v53, %v509_v13 }
 0x67e   :  { %v512_v16 = vpop.xlane.xlu1 %511 }
 0x67f   :  { %v515_v18 = vmul.f32 1.442695, %v513_v14  ;;  %v514_v19 = vsub.f32 %v504_v56, %v512_v16 }
 0x681   :  { %2594 = vpow2.f32 %v515_v18  ;;  %v517_v20 = vmul.f32 1.442695, %v514_v19 }
 0x682   :  { %v652_v39 = vpop.permute.xlu1 %651 }
 0x683   :  { %2596 = vpow2.f32 %v517_v20  ;;  %v657_v43 = vsel %vm215_vm1, %v652_v39, 0 }
 0x684   :  { %v632_v21 = vpop.xlane.xlu0 %631 }
 0x685   :  { %v636_v22 = vsub.f32 %v624_v61, %v632_v21 }
 0x687   :  { %v638_v23 = vmul.f32 1.442695, %v636_v22 }
 0x688   :  { %v635_v24 = vpop.xlane.xlu0 %634 }
 0x689   :  { %2598 = vpow2.f32 %v638_v23  ;;  %v637_v25 = vsub.f32 %v627_v0, %v635_v24  ;;  %v2567_v24 = vld [vmem:[%s3259_s1 + $0x98] sm:$0xff]  }
 0x68a   :  { %2382 = vmatpush3.bf16.msra.mxu1 %v2567_v24 }
 0x68b   :  { %v2595_v26 = vpop.eup %2594  ;;  %v640_v27 = vmul.f32 1.442695, %v637_v25  ;;  %2395 = vmatprep.subr.bf16.mxu1 %v2700_v50 }
 0x68c   :  { %v755_v28 = vpop.xlane.xlu0 %754  ;;  %v519_v29 = vsel %vm382_vm7, %v2595_v26, 0.0 }
 0x68d   :  { %v2597_v12 = vpop.eup %2596  ;;  %2600 = vpow2.f32 %v640_v27  ;;  %v759_v30 = vsub.f32 %v747_v5, %v755_v28  ;;  %520 = vadd.xlane.f32.xlu1 %v519_v29 }
 0x68e   :  { %v522_v31 = vsel %vm386_vm8, %v2597_v12, 0.0  ;;  %v527_v41 = vpack.c.bf16 %v2597_v12, %v2595_v26 }
 0x68f   :  { %v761_v32 = vmul.f32 1.442695, %v759_v30  ;;  %523 = vadd.xlane.f32.xlu0 %v522_v31 }
 0x690   :  { %v529_v37 = vpop.permute.xlu0 %528 }
 0x691   :  { %2602 = vpow2.f32 %v761_v32  ;;  %v534_v38 = vsel %vm215_vm1, %v529_v37, 0 }
 0x692   :  { %2350 = vmatpush3.bf16.msra.mxu0 %v534_v38 }
 0x693   :  { %v2599_v40 = vpop.eup %2598  ;;  %2361 = vmatprep.subr.bf16.mxu0 %v2700_v50 }
 0x694   :  { %v642_v42 = vsel %vm382_vm7, %v2599_v40, 0.0 }
 0x695   :  { %643 = vadd.xlane.f32.xlu0 %v642_v42  ;;  %2352 = vmatmul.mubr.msk.bf16.vlgmr.msra.gmra.mrb[4].mxu0 %vm382_vm7, %v527_v41 }
 0x696   :  { %2362 = vmatpush3.bf16.msra.mxu0 %v657_v43  ;;  %2363 = vmatprep.mubr.msk.bf16.mxu0 %vm2701_vm5, %v2700_v50 }
 0x697   :  { %v2601_v44 = vpop.eup %2600  ;;  %2373 = vmatprep.subr.bf16.mxu0 %v2700_v50 }
 0x698   :  { %v645_v45 = vsel %vm386_vm8, %v2601_v44, 0.0  ;;  %v650_v48 = vpack.c.bf16 %v2601_v44, %v2599_v40 }
 0x699   :  { %646 = vadd.xlane.f32.xlu0 %v645_v45 }
 0x69b   :  { %v2603_v46 = vpop.eup %2602 }
 0x69c   :  { %v765_v51 = vsel %vm382_vm7, %v2603_v46, 0.0 }
 0x69d   :  { %2364 = vmatmul.mubr.msk.bf16.vlgmr.msra.gmra.mrb[8].mxu0 %vm382_vm7, %v650_v48  ;;  %766 = vadd.xlane.f32.xlu1 %v765_v51 }
 0x69e   :  { %2375 = vmatprep.mubr.msk.bf16.mxu0 %vm2701_vm5, %v2700_v50 }
 0x6a1   :  { %397 = vadd.xlane.f32.xlu1 %v396_v52 }
 0x6b3   :  { %v758_v53 = vpop.xlane.xlu1 %757 }
 0x6b4   :  { %v760_v54 = vsub.f32 %v750_v10, %v758_v53 }
 0x6b6   :  { %v763_v55 = vmul.f32 1.442695, %v760_v54 }
 0x6b7   :  { %v775_v56 = vpop.permute.xlu1 %774 }
 0x6b8   :  { %2604 = vpow2.f32 %v763_v55  ;;  %v780_v57 = vsel %vm215_vm1, %v775_v56, 0 }
 0x6b9   :  { %2374 = vmatpush3.bf16.msra.mxu0 %v780_v57 }
 0x6ba   :  { %2387 = vmatprep.subr.bf16.mxu0 %v2700_v50 }
 0x6c2   :  { %v2605_v58 = vpop.eup %2604 }
 0x6c3   :  { %v768_v59 = vsel %vm386_vm8, %v2605_v58, 0.0  ;;  %v773_v60 = vpack.c.bf16 %v2605_v58, %v2603_v46 }
 0x6c4   :  { %769 = vadd.xlane.f32.xlu0 %v768_v59 }
 0x6c5   :  { %2376 = vmatmul.mubr.msk.bf16.vlgmr.msra.gmra.mrb[12].mxu0 %vm382_vm7, %v773_v60 }
 0x6c6   :  { %2391 = vmatprep.mubr.msk.bf16.mxu0 %vm2701_vm5, %v2700_v50 }
 0x6c8   :  { %400 = vadd.xlane.f32.xlu0 %v399_v34  ;;  %v2189_v34 = vld [vmem:[%s3260_s2 + $0x9] ss:$0 sm:$0xff] }
 0x71a   :  { %v521_v62 = vpop.xlane.xlu1 %520 }
 0x71b   :  { %2606 = vrcp.f32 %v521_v62 }
 0x71c   :  { %v524_v61 = vpop.xlane.xlu0 %523 }
 0x71d   :  { %2608 = vrcp.f32 %v524_v61 }
 0x722   :  { %v644_v63 = vpop.xlane.xlu0 %643 }
 0x723   :  { %2610 = vrcp.f32 %v644_v63 }
 0x725   :  { %v2607_v2 = vpop.eup %2606 }
 0x726   :  { %v647_v0 = vpop.xlane.xlu0 %646 }
 0x727   :  { %2612 = vrcp.f32 %v647_v0  ;;  %v2609_v4 = vpop.eup %2608 }
 0x72a   :  { %v767_v22 = vpop.xlane.xlu1 %766 }
 0x72b   :  { %2614 = vrcp.f32 %v767_v22 }
 0x72d   :  { %v2611_v11 = vpop.eup %2610 }
 0x72e   :  { %v398_v37 = vpop.xlane.xlu1 %397 }
 0x731   :  { %v2613_v14 = vpop.eup %2612 }
 0x735   :  { %v2615_v26 = vpop.eup %2614 }
 0x751   :  { %v770_v23 = vpop.xlane.xlu0 %769 }
 0x752   :  { %2616 = vrcp.f32 %v770_v23 }
 0x753   :  { %2618 = vrcp.f32 %v398_v37 }
 0x755   :  { %v401_v38 = vpop.xlane.xlu0 %400 }
 0x756   :  { %2620 = vrcp.f32 %v401_v38  ;;  %v2570_v38 = vld [vmem:[%s3259_s1 + $0xb0] sm:$0xff]  }
 0x75c   :  { %v2617_v28 = vpop.eup %2616 }
 0x75d   :  { %v2619_v40 = vpop.eup %2618 }
 0x75e   :  { %v454_v48 = vmul.f32 %v2619_v40, %v2899_v47  ;;  %v2572_v40 = vld [vmem:[%s3259_s1 + $0xc0] sm:$0xff]  }
 0x760   :  { %v2621_v42 = vpop.eup %2620 }
 0x761   :  { %v455_v51 = vmul.f32 %v2621_v42, %v2901_v49  ;;  %v2192_v42 = vld [vmem:[%s3260_s2 + $0xc] ss:$0 sm:$0xff] }
 0x768   :  { %v570_v1 = vpop.f32.mrb[4].mxu0 }
 0x769   :  { %v2353_v3 = vpop.f32.mrb[5].mxu0  ;;  %v577_v6 = vmul.f32 %v2607_v2, %v570_v1 }
 0x76a   :  { %v573_v5 = vpop.f32.mrb[6].mxu0 }
 0x76b   :  { %v578_v7 = vmul.f32 %v2609_v4, %v573_v5  ;;  %v2354_v8 = vpop.f32.mrb[7].mxu0 }
 0x76d   :  { %v2516_v9 = vpack.i.bf16 %v578_v7, %v577_v6 }
 0x76f   :  { %2517 = vrot.lane.b32.xlu1 %v2516_v9, %s2713_s21 }
 0x770   :  { %v693_v10 = vpop.f32.mrb[8].mxu0 }
 0x771   :  { %v2365_v13 = vpop.f32.mrb[9].mxu0  ;;  %v700_v18 = vmul.f32 %v2611_v11, %v693_v10 }
 0x772   :  { %v696_v16 = vpop.f32.mrb[10].mxu0 }
 0x773   :  { %v701_v19 = vmul.f32 %v2613_v14, %v696_v16  ;;  %v2366_v20 = vpop.f32.mrb[11].mxu0  ;;  %v2568_v14 = vld [vmem:[%s3259_s1 + $0xa0] sm:$0xff]   ;;  %v2569_v16 = vld [vmem:[%s3259_s1 + $0xa8] sm:$0xff]  }
 0x774   :  { %2388 = vmatpush3.bf16.msra.mxu0 %v2568_v14 }
 0x775   :  { %v2521_v21 = vpack.i.bf16 %v701_v19, %v700_v18  ;;  %2389 = vmatprep.subr.bf16.mxu0 %v2700_v50 }
 0x777   :  { %2522 = vrot.lane.b32.xlu0 %v2521_v21, %s2714_s22 }
 0x778   :  { %2390 = vmatpush3.bf16.msra.mxu0 %v2569_v16 }
 0x779   :  { %2407 = vmatprep.subr.bf16.mxu0 %v2700_v50 }
 0x798   :  { %v816_v25 = vpop.f32.mrb[12].mxu0 }
 0x799   :  { %v2377_v27 = vpop.f32.mrb[13].mxu0  ;;  %v823_v12 = vmul.f32 %v2615_v26, %v816_v25  ;;  %v2190_v25 = vld [vmem:[%s3260_s2 + $0xa] ss:$0 sm:$0xff] }
 0x79a   :  { %v819_v29 = vpop.f32.mrb[14].mxu0 }
 0x79b   :  { %v824_v30 = vmul.f32 %v2617_v28, %v819_v29  ;;  %v2378_v31 = vpop.f32.mrb[15].mxu0 }
 0x79d   :  { %v2526_v32 = vpack.i.bf16 %v824_v30, %v823_v12  ;;  %v2191_v12 = vld [vmem:[%s3260_s2 + $0xb] ss:$0 sm:$0xff] }
 0x79f   :  { %2527 = vrot.lane.b32.xlu1 %v2526_v32, %s2715_s25 }
 0x7e1   :  { %v2518_v39 = vpop.permute.xlu1 %2517 }
 0x7e2   :  { %v2520_v43 = vunpack.i.h.bf16 %v2518_v39  ;;  %v2519_v44 = vunpack.i.l.bf16 %v2518_v39  ;;  %v2571_v39 = vld [vmem:[%s3259_s1 + $0xb8] sm:$0xff]  }
 0x7e4   :  { %v850_v53 = vsel %vm334_vm6, %v455_v51, %v2520_v43  ;;  %v849_v54 = vsel %vm334_vm6, %v454_v48, %v2519_v44 }
 0x7e9   :  { %v2523_v41 = vpop.permute.xlu0 %2522 }
 0x7ea   :  { %v2525_v45 = vunpack.i.h.bf16 %v2523_v41  ;;  %v2524_v46 = vunpack.i.l.bf16 %v2523_v41  ;;  %v2573_v41 = vld [vmem:[%s3259_s1 + $0xc8] sm:$0xff]  }
 0x7ec   :  { %v852_v57 = vsel %vm851_vm9, %v849_v54, %v2524_v46  ;;  %v853_v58 = vsel %vm851_vm9, %v850_v53, %v2525_v45 }
 0x811   :  { %v2528_v52 = vpop.permute.xlu1 %2527 }
 0x812   :  { %v2530_v55 = vunpack.i.h.bf16 %v2528_v52  ;;  %v2529_v56 = vunpack.i.l.bf16 %v2528_v52 }
 0x814   :  { %v855_v59 = vsel %vm854_vm10, %v852_v57, %v2529_v56  ;;  %v856_v60 = vsel %vm854_vm10, %v853_v58, %v2530_v55 }
 0x815   :  { %v861_v47 = vpack.c.bf16 %v856_v60, %v855_v59 }
 0x817   :  { %2384 = vmatmul.mubr.msk.bf16.vlgmr.msra.gmra.mrb[24].mxu1 %vm223_vm3, %v861_v47 }
 0x818   :  { %2403 = vmatprep.mubr.msk.bf16.mxu1 %vm2701_vm5, %v2700_v50  ;;  %2396 = vmatpush3.bf16.msra.mxu1 %v2570_v38 }
 0x819   :  { %2397 = vmatprep.subr.bf16.mxu1 %v2700_v50 }
 0x81c   :  { %2398 = vmatpush3.bf16.msra.mxu1 %v2571_v39 }
 0x81d   :  { %2399 = vmatprep.subr.bf16.mxu1 %v2700_v50 }
 0x820   :  { %2400 = vmatpush3.bf16.msra.mxu1 %v2572_v40 }
 0x821   :  { %2401 = vmatprep.subr.bf16.mxu1 %v2700_v50 }
 0x824   :  { %2402 = vmatpush3.bf16.msra.mxu1 %v2573_v41 }
 0x825   :  { %2421 = vmatprep.subr.bf16.mxu1 %v2700_v50 }
 0x8ea   :  { %v911_v49 = vpop.f32.mrb[24].mxu1 }
 0x8eb   :  { %v918_v61 = vadd.f32 %v911_v49, %v2799_v36  ;;  %v2385_v62 = vpop.f32.mrb[25].mxu1 }
 0x8ec   :  { %v914_v63 = vpop.f32.mrb[26].mxu1 }
 0x8ed   :  { %v2972_v0 = vadd.f32 %v2189_v34, %v918_v61  ;;  %v919_v1 = vadd.f32 %v914_v63, %v2794_v33  ;;  %v2386_v2 = vpop.f32.mrb[27].mxu1 }
 0x8ef   :  { %v2975_v3 = vadd.f32 %v2189_v34, %v919_v1  ;;  %v929_v4 = vsel %vm223_vm3, %v2972_v0, 0.0 }
 0x8f0   :  { %930 = vadd.xlane.f32.xlu1 %v929_v4 }
 0x8f1   :  { %v932_v5 = vsel %vm227_vm4, %v2975_v3, 0.0 }
 0x8f2   :  { %933 = vadd.xlane.f32.xlu0 %v932_v5 }
 0x97d   :  { %v931_v6 = vpop.xlane.xlu1 %930 }
 0x97e   :  { %v935_v7 = vmul.f32 0.03125, %v931_v6 }
 0x97f   :  { %v934_v36 = vpop.xlane.xlu0 %933 }
 0x980   :  { %v937_v8 = vsub.f32 %v2972_v0, %v935_v7  ;;  %v936_v35 = vmul.f32 0.03125, %v934_v36  ;;  %v2201_v7 = vld [vmem:[%s3260_s2 + $0xd] ss:$0 sm:$0xff] }
 0x982   :  { %v938_v9 = vsub.f32 %v2975_v3, %v936_v35  ;;  %v939_v33 = vmul.f32 %v937_v8, %v937_v8 }
 0x984   :  { %v941_v10 = vsel %vm223_vm3, %v939_v33, 0.0  ;;  %v940_v11 = vmul.f32 %v938_v9, %v938_v9 }
 0x985   :  { %942 = vadd.xlane.f32.xlu0 %v941_v10 }
 0x986   :  { %v944_v13 = vsel %vm227_vm4, %v940_v11, 0.0 }
 0x987   :  { %945 = vadd.xlane.f32.xlu1 %v944_v13 }
 0xa12   :  { %v943_v18 = vpop.xlane.xlu0 %942 }
 0xa13   :  { %v947_v19 = vmul.f32 0.03125, %v943_v18 }
 0xa14   :  { %v946_v20 = vpop.xlane.xlu1 %945 }
 0xa15   :  { %v949_v21 = vadd.f32 1e-06, %v947_v19  ;;  %v948_v22 = vmul.f32 0.03125, %v946_v20 }
 0xa17   :  { %2622 = vrsqrt.f32 %v949_v21  ;;  %v950_v23 = vadd.f32 1e-06, %v948_v22 }
 0xa19   :  { %2624 = vrsqrt.f32 %v950_v23 }
 0xa21   :  { %v2623_v24 = vpop.eup %2622 }
 0xa22   :  { %v953_v26 = vmul.f32 %v2623_v24, %v937_v8 }
 0xa23   :  { %v2625_v27 = vpop.eup %2624 }
 0xa24   :  { %v959_v28 = vmul.f32 %v2190_v25, %v953_v26  ;;  %v954_v29 = vmul.f32 %v2625_v27, %v938_v9  ;;  %v2575_v26 = vld [vmem:[%s3259_s1 + $0xd8] sm:$0xff]  }
 0xa26   :  { %v960_v30 = vmul.f32 %v2190_v25, %v954_v29  ;;  %v965_v31 = vadd.f32 %v2191_v12, %v959_v28  ;;  %v2574_v25 = vld [vmem:[%s3259_s1 + $0xd0] sm:$0xff]  }
 0xa28   :  { %v966_v32 = vadd.f32 %v2191_v12, %v960_v30 }
 0xa2a   :  { %v971_v37 = vpack.c.bf16 %v966_v32, %v965_v31 }
 0xa2c   :  { %2392 = vmatmul.mubr.msk.bf16.vlgmr.msra.gmra.mrb[16].mxu0 %vm223_vm3, %v971_v37  ;;  %v2202_v37 = vld [vmem:[%s3260_s2 + $0xe] ss:$0 sm:$0xff] }
 0xa2d   :  { %2411 = vmatprep.mubr.msk.bf16.mxu0 %vm2701_vm5, %v2700_v50  ;;  %2408 = vmatpush3.bf16.msra.mxu0 %v2574_v25 }
 0xa2e   :  { %2409 = vmatprep.subr.bf16.mxu0 %v2700_v50 }
 0xa31   :  { %2410 = vmatpush3.bf16.msra.mxu0 %v2575_v26 }
 0xa32   :  { %2415 = vmatprep.subr.bf16.mxu0 %v2700_v50 }
 0xaff   :  { %v1026_v43 = vpop.f32.mrb[16].mxu0 }
 0xb00   :  { %v1027_v44 = vadd.f32 %v2192_v42, %v1026_v43  ;;  %v2393_v45 = vpop.f32.mrb[17].mxu0 }
 0xb01   :  { %v1029_v46 = vpop.f32.mrb[18].mxu0 }
 0xb02   :  { %v1035_v48 = vmul.f32 0.044715, %v1027_v44  ;;  %v1030_v51 = vadd.f32 %v2192_v42, %v1029_v46  ;;  %v2394_v52 = vpop.f32.mrb[19].mxu0  ;;  %v1033_v62 = vmul.f32 0.5, %v1027_v44  ;;  %v2203_v42 = vld [vmem:[%s3260_s2 + $0xf] ss:$0 sm:$0xff] }
 0xb04   :  { %v1037_v53 = vmul.f32 %v1035_v48, %v1027_v44  ;;  %v1036_v54 = vmul.f32 0.044715, %v1030_v51  ;;  %v1034_v63 = vmul.f32 0.5, %v1030_v51  ;;  %v2204_v48 = vld [vmem:[%s3260_s2 + $0x10] ss:$0 sm:$0xff] }
 0xb06   :  { %v1039_v55 = vmul.f32 %v1037_v53, %v1027_v44  ;;  %v1038_v56 = vmul.f32 %v1036_v54, %v1030_v51 }
 0xb08   :  { %v1041_v57 = vadd.f32 %v1039_v55, %v1027_v44  ;;  %v1040_v58 = vmul.f32 %v1038_v56, %v1030_v51 }
 0xb0a   :  { %v1043_v59 = vmul.f32 0.7978846, %v1041_v57  ;;  %v1042_v60 = vadd.f32 %v1040_v58, %v1030_v51 }
 0xb0c   :  { %2626 = vtanh.f32 %v1043_v59  ;;  %v1044_v47 = vmul.f32 0.7978846, %v1042_v60 }
 0xb0e   :  { %2628 = vtanh.f32 %v1044_v47 }
 0xb16   :  { %v2627_v49 = vpop.eup %2626 }
 0xb17   :  { %v1047_v34 = vadd.f32 1.0, %v2627_v49 }
 0xb18   :  { %v2629_v61 = vpop.eup %2628 }
 0xb19   :  { %v1048_v1 = vadd.f32 1.0, %v2629_v61  ;;  %v1049_v2 = vmul.f32 %v1047_v34, %v1033_v62 }
 0xb1b   :  { %v1050_v4 = vmul.f32 %v1048_v1, %v1034_v63 }
 0xb1d   :  { %v1059_v5 = vpack.c.bf16 %v1050_v4, %v1049_v2 }
 0xb1f   :  { %2404 = vmatmul.mubr.msk.bf16.vlgmr.msra.gmra.mrb[28].mxu1 %vm1084_vm11, %v1059_v5 }
 0xb20   :  { %2423 = vmatprep.mubr.msk.bf16.mxu1 %vm2701_vm5, %v2700_v50 }
 0xbf2   :  { %v1122_v6 = vpop.f32.mrb[28].mxu1 }
 0xbf3   :  { %v1129_v36 = vadd.f32 %v1122_v6, %v2972_v0  ;;  %v2405_v8 = vpop.f32.mrb[29].mxu1 }
 0xbf4   :  { %v1125_v35 = vpop.f32.mrb[30].mxu1 }
 0xbf5   :  { %v3028_v9 = vadd.f32 %v2201_v7, %v1129_v36  ;;  %v1130_v33 = vadd.f32 %v1125_v35, %v2975_v3  ;;  %v2406_v10 = vpop.f32.mrb[31].mxu1 }
 0xbf7   :  { %v3031_v11 = vadd.f32 %v2201_v7, %v1130_v33  ;;  %v1140_v13 = vsel %vm223_vm3, %v3028_v9, 0.0 }
 0xbf8   :  { %1141 = vadd.xlane.f32.xlu0 %v1140_v13 }
 0xbf9   :  { %v1143_v14 = vsel %vm227_vm4, %v3031_v11, 0.0 }
 0xbfa   :  { %1144 = vadd.xlane.f32.xlu1 %v1143_v14 }
 0xc85   :  { %v1142_v16 = vpop.xlane.xlu0 %1141 }
 0xc86   :  { %v1146_v18 = vmul.f32 0.03125, %v1142_v16 }
 0xc87   :  { %v1145_v0 = vpop.xlane.xlu1 %1144 }
 0xc88   :  { %v1148_v19 = vsub.f32 %v3028_v9, %v1146_v18  ;;  %v1147_v20 = vmul.f32 0.03125, %v1145_v0 }
 0xc8a   :  { %v1149_v21 = vsub.f32 %v3031_v11, %v1147_v20  ;;  %v1150_v3 = vmul.f32 %v1148_v19, %v1148_v19 }
 0xc8c   :  { %v1152_v22 = vsel %vm223_vm3, %v1150_v3, 0.0  ;;  %v1151_v23 = vmul.f32 %v1149_v21, %v1149_v21 }
 0xc8d   :  { %1153 = vadd.xlane.f32.xlu0 %v1152_v22 }
 0xc8e   :  { %v1155_v24 = vsel %vm227_vm4, %v1151_v23, 0.0 }
 0xc8f   :  { %1156 = vadd.xlane.f32.xlu1 %v1155_v24 }
 0xd1a   :  { %v1154_v27 = vpop.xlane.xlu0 %1153 }
 0xd1b   :  { %v1158_v28 = vmul.f32 0.03125, %v1154_v27 }
 0xd1c   :  { %v1157_v29 = vpop.xlane.xlu1 %1156 }
 0xd1d   :  { %v1160_v12 = vadd.f32 1e-06, %v1158_v28  ;;  %v1159_v30 = vmul.f32 0.03125, %v1157_v29 }
 0xd1f   :  { %2630 = vrsqrt.f32 %v1160_v12  ;;  %v1161_v31 = vadd.f32 1e-06, %v1159_v30 }
 0xd21   :  { %2632 = vrsqrt.f32 %v1161_v31 }
 0xd29   :  { %v2631_v32 = vpop.eup %2630 }
 0xd2a   :  { %v1164_v38 = vmul.f32 %v2631_v32, %v1148_v19 }
 0xd2b   :  { %v2633_v39 = vpop.eup %2632 }
 0xd2c   :  { %v1170_v40 = vmul.f32 %v2202_v37, %v1164_v38  ;;  %v1165_v41 = vmul.f32 %v2633_v39, %v1149_v21 }
 0xd2e   :  { %v1171_v43 = vmul.f32 %v2202_v37, %v1165_v41  ;;  %v1176_v44 = vadd.f32 %v2203_v42, %v1170_v40 }
 0xd30   :  { %v1177_v45 = vadd.f32 %v2203_v42, %v1171_v43 }
 0xd32   :  { %v1182_v46 = vpack.c.bf16 %v1177_v45, %v1176_v44 }
 0xd34   :  { %2412 = vmatmul.mubr.msk.bf16.vlgmr.msra.gmra.mrb[20].mxu0 %vm223_vm3, %v1182_v46 }
 0xd35   :  { %2417 = vmatprep.mubr.msk.bf16.mxu0 %vm2701_vm5, %v2700_v50 }
 0xe07   :  { %v1237_v51 = vpop.f32.mrb[20].mxu0 }
 0xe08   :  { %v2413_v52 = vpop.f32.mrb[21].mxu0  ;;  %v1238_v54 = vadd.f32 %v2204_v48, %v1237_v51 }
 0xe09   :  { %v1240_v53 = vpop.f32.mrb[22].mxu0 }
 0xe0a   :  { %v1241_v55 = vadd.f32 %v2204_v48, %v1240_v53  ;;  %v2414_v56 = vpop.f32.mrb[23].mxu0 }
 0xe0c   :  { %v3061_v57 = vpack.c.bf16 %v1241_v55, %v1238_v54 }
 0xe0e   :  { %1369 = vrot.lane.b32.xlu1 %v3061_v57, %s2703_s6  ;;  %1246 = vrot.lane.b32.xlu0 %v3061_v57, %s2702_s5 }
 0xe12   :  { %1367 = vrot.lane.b32.xlu1 %v3061_v57, %s2707_s14  ;;  %1490 = vrot.lane.b32.xlu0 %v3061_v57, %s2708_s15 }
 0xe16   :  { %1492 = vrot.lane.b32.xlu1 %v3061_v57, %s2704_s7  ;;  %1613 = vrot.lane.b32.xlu0 %v3061_v57, %s2709_s16  ;;  %s2716_s16 = smov [#allocation2]  }
 0xe1a   :  { %1615 = vrot.lane.b32.xlu1 %v3061_v57, %s2705_s8 }
 0xe1e   :  { %1316 = vrot.lane.b32.xlu1 %v3061_v57, %s2706_s13 }
 0xe80   :  { %v1370_v58 = vpop.permute.xlu1 %1369  ;;  %v1247_v59 = vpop.permute.xlu0 %1246 }
 0xe81   :  { %v1252_v60 = vsel %vm334_vm6, %v1247_v59, 0  ;;  %v1375_v34 = vsel %vm334_vm6, %v1370_v58, 0 }
 0xe82   :  { %2416 = vmatpush3.bf16.xpose.msra.mxu0 %v1252_v60 }
 0xe83   :  { %2427 = vmatprep.subr.bf16.mxu0 %v2700_v50 }
 0xe84   :  { %v1368_v47 = vpop.permute.xlu1 %1367  ;;  %v1491_v2 = vpop.permute.xlu0 %1490 }
 0xe88   :  { %v1493_v49 = vpop.permute.xlu1 %1492  ;;  %v1614_v5 = vpop.permute.xlu0 %1613 }
 0xe89   :  { %2418 = vmatmul.mubr.msk.bf16.vlgmr.msra.gmra.mrb[24].mxu0 %vm334_vm6, %v3061_v57  ;;  %v1498_v63 = vsel %vm334_vm6, %v1493_v49, 0 }
 0xe8a   :  { %2428 = vmatpush3.bf16.xpose.msra.mxu0 %v1375_v34  ;;  %2429 = vmatprep.mubr.msk.bf16.mxu0 %vm2701_vm5, %v2700_v50 }
 0xe8b   :  { %2439 = vmatprep.subr.bf16.mxu0 %v2700_v50 }
 0xe8c   :  { %v1616_v61 = vpop.permute.xlu1 %1615 }
 0xe8d   :  { %v1621_v4 = vsel %vm334_vm6, %v1616_v61, 0 }
 0xe90   :  { %v1317_v62 = vpop.permute.xlu1 %1316 }
 0xe91   :  { %v1322_v1 = vsel %vm215_vm1, %v1317_v62, 0  ;;  %2430 = vmatmul.mubr.msk.bf16.vlgmr.msra.gmra.mrb[28].mxu0 %vm334_vm6, %v1368_v47 }
 0xe92   :  { %2422 = vmatpush3.bf16.msra.mxu1 %v1322_v1  ;;  %2440 = vmatpush3.bf16.xpose.msra.mxu0 %v1498_v63 }
 0xe93   :  { %2441 = vmatprep.mubr.msk.bf16.mxu0 %vm2701_vm5, %v2700_v50  ;;  %2451 = vmatprep.subr.bf16.mxu0 %v2700_v50 }
 0xe94   :  { %2433 = vmatprep.subr.bf16.mxu1 %v2700_v50 }
 0xe99   :  { %2442 = vmatmul.mubr.msk.bf16.vlgmr.msra.gmra.mrb[32].mxu0 %vm334_vm6, %v1491_v2 }
 0xe9a   :  { %2452 = vmatpush3.bf16.xpose.msra.mxu0 %v1621_v4  ;;  %2453 = vmatprep.mubr.msk.bf16.mxu0 %vm2701_vm5, %v2700_v50 }
 0xe9b   :  { %2463 = vmatprep.subr.bf16.mxu0 %v2700_v50 }
 0xea1   :  { %2454 = vmatmul.mubr.msk.bf16.vlgmr.msra.gmra.mrb[36].mxu0 %vm334_vm6, %v1614_v5 }
 0xea2   :  { %2467 = vmatprep.mubr.msk.bf16.mxu0 %vm2701_vm5, %v2700_v50 }
 0xf5c   :  { %v1288_v6 = vpop.f32.mrb[24].mxu0 }
 0xf5d   :  { %v1289_v7 = vadd.f32 %v1288_v6, %v2854_v15  ;;  %v2419_v36 = vpop.f32.mrb[25].mxu0 }
 0xf5e   :  { %v1291_v8 = vpop.f32.mrb[26].mxu0 }
 0xf5f   :  { %v1292_v35 = vadd.f32 %v1291_v8, %v2859_v17  ;;  %v2420_v33 = vpop.f32.mrb[27].mxu0  ;;  %v1295_v10 = vsel %vm382_vm7, %v1289_v7, -inf }
 0xf60   :  { %1296 = vmax.xlane.f32.xlu1 %v1295_v10 }
 0xf61   :  { %v1298_v13 = vsel %vm386_vm8, %v1292_v35, -inf }
 0xf62   :  { %1299 = vmax.xlane.f32.xlu0 %v1298_v13 }
 0xf64   :  { %v1411_v14 = vpop.f32.mrb[28].mxu0 }
 0xf65   :  { %v1412_v16 = vadd.f32 %v1411_v14, %v2854_v15  ;;  %v2431_v18 = vpop.f32.mrb[29].mxu0 }
 0xf66   :  { %v1414_v0 = vpop.f32.mrb[30].mxu0 }
 0xf67   :  { %v1415_v19 = vadd.f32 %v1414_v0, %v2859_v17  ;;  %v2432_v20 = vpop.f32.mrb[31].mxu0  ;;  %v1418_v21 = vsel %vm382_vm7, %v1412_v16, -inf }
 0xf68   :  { %1419 = vmax.xlane.f32.xlu0 %v1418_v21 }
 0xf69   :  { %v1421_v3 = vsel %vm386_vm8, %v1415_v19, -inf }
 0xf6c   :  { %1422 = vmax.xlane.f32.xlu0 %v1421_v3  ;;  %v1534_v22 = vpop.f32.mrb[32].mxu0 }
 0xf6d   :  { %v1535_v23 = vadd.f32 %v1534_v22, %v2854_v15  ;;  %v2443_v24 = vpop.f32.mrb[33].mxu0 }
 0xf6e   :  { %v1537_v25 = vpop.f32.mrb[34].mxu0 }
 0xf6f   :  { %v1538_v26 = vadd.f32 %v1537_v25, %v2859_v17  ;;  %v2444_v27 = vpop.f32.mrb[35].mxu0  ;;  %v1541_v28 = vsel %vm382_vm7, %v1535_v23, -inf }
 0xf70   :  { %1542 = vmax.xlane.f32.xlu1 %v1541_v28 }
 0xf71   :  { %v1544_v29 = vsel %vm386_vm8, %v1538_v26, -inf }
 0xf72   :  { %1545 = vmax.xlane.f32.xlu0 %v1544_v29 }
 0xf74   :  { %v1657_v12 = vpop.f32.mrb[36].mxu0 }
 0xf75   :  { %v1658_v30 = vadd.f32 %v1657_v12, %v2854_v15  ;;  %v2455_v31 = vpop.f32.mrb[37].mxu0 }
 0xf76   :  { %v1660_v32 = vpop.f32.mrb[38].mxu0 }
 0xf77   :  { %v1661_v37 = vadd.f32 %v1660_v32, %v2859_v17  ;;  %v2456_v38 = vpop.f32.mrb[39].mxu0  ;;  %v1664_v39 = vsel %vm382_vm7, %v1658_v30, -inf }
 0xf78   :  { %1665 = vmax.xlane.f32.xlu1 %v1664_v39 }
 0xf79   :  { %v1667_v40 = vsel %vm386_vm8, %v1661_v37, -inf }
 0xf7a   :  { %1668 = vmax.xlane.f32.xlu0 %v1667_v40 }
 0xf89   :  { %1562 = vrot.lane.b32.xlu1 %v3061_v57, %s2710_s0  ;;  %s2145_s0 = sshll.u32 %s2716_s16, 4  ;;  %s2146_s0 = int_to_ptr.vmem [resolvable:$true] %s2145_s0 }
 0xf8a   :  { %p2681_p1 = scmp.lt.s32.totalorder %s2146_s0, %s2146_s0 }
 0xf8d   :  { %1685 = vrot.lane.b32.xlu1 %v3061_v57, %s2712_s18 }
 0xf90   :  { %1439 = vrot.lane.b32.xlu0 %v3061_v57, %s2711_s17  ;;  %s2676_s17 = scalar_lea.vmem %s2146_s0, 32 }
 0xf91   :  { %p2677_p0 = scmp.ne.s32.totalorder %s2146_s0, %s2676_s17  ;;  %p2682_p2 = scmp.lt.s32.totalorder %s2676_s17, %s2676_s17 }
 0xf93   :  { %p2683_p3 = por %p2682_p2, %p2681_p1 }
 0xf95   :  { %p2684_p4 = pnand %p2683_p3, %p2677_p0 }
 0xfed   :  { %v1297_v15 = vpop.xlane.xlu1 %1296 }
 0xfee   :  { %v1301_v41 = vsub.f32 %v1289_v7, %v1297_v15 }
 0xfef   :  { %v1300_v42 = vpop.xlane.xlu0 %1299 }
 0xff0   :  { %v1303_v17 = vmul.f32 1.442695, %v1301_v41  ;;  %v1302_v43 = vsub.f32 %v1292_v35, %v1300_v42 }
 0xff2   :  { %v1305_v44 = vmul.f32 1.442695, %v1302_v43  ;;  %2634 = vpow2.f32 %v1303_v17 }
 0xff4   :  { %2636 = vpow2.f32 %v1305_v44 }
 0xff5   :  { %v1420_v45 = vpop.xlane.xlu0 %1419 }
 0xff6   :  { %v1424_v46 = vsub.f32 %v1412_v16, %v1420_v45  ;;  %v2576_v45 = vld [vmem:[%s3259_s1 + $0xe0] sm:$0xff]  }
 0xff7   :  { %2464 = vmatpush3.bf16.msra.mxu0 %v2576_v45 }
 0xff8   :  { %v1426_v48 = vmul.f32 1.442695, %v1424_v46  ;;  %2465 = vmatprep.subr.bf16.mxu0 %v2700_v50 }
 0xff9   :  { %v1423_v51 = vpop.xlane.xlu0 %1422 }
 0xffa   :  { %2638 = vpow2.f32 %v1426_v48  ;;  %v1425_v52 = vsub.f32 %v1415_v19, %v1423_v51 }
 0xffc   :  { %v1428_v53 = vmul.f32 1.442695, %v1425_v52  ;;  %v2635_v54 = vpop.eup %2634 }
 0xffd   :  { %v1543_v55 = vpop.xlane.xlu1 %1542  ;;  %v1307_v24 = vsel %vm382_vm7, %v2635_v54, 0.0 }
 0xffe   :  { %v2637_v56 = vpop.eup %2636  ;;  %2640 = vpow2.f32 %v1428_v53  ;;  %v1547_v57 = vsub.f32 %v1535_v23, %v1543_v55 }
 0xfff   :  { %v1546_v58 = vpop.xlane.xlu0 %1545  ;;  %v1315_v59 = vpack.c.bf16 %v2637_v56, %v2635_v54  ;;  %v1310_v25 = vsel %vm386_vm8, %v2637_v56, 0.0 }
0x1000   :  { %v1549_v60 = vmul.f32 1.442695, %v1547_v57  ;;  %v1548_v47 = vsub.f32 %v1538_v26, %v1546_v58 }
0x1001   :  { %2424 = vmatmul.mubr.msk.bf16.vlgmr.msra.gmra.mrb[32].mxu1 %vm382_vm7, %v1315_v59  ;;  %v2577_v59 = vld [vmem:[%s3259_s1 + $0xe8] sm:$0xff]  }
0x1002   :  { %2642 = vpow2.f32 %v1549_v60  ;;  %v1551_v49 = vmul.f32 1.442695, %v1548_v47  ;;  %2435 = vmatprep.mubr.msk.bf16.mxu1 %vm2701_vm5, %v2700_v50  ;;  %2466 = vmatpush3.bf16.msra.mxu0 %v2577_v59  ;;  %v2220_v59 = vld [vmem:[%s3260_s2 + $0x12] ss:$0 sm:$0xff] }
0x1003   :  { %2479 = vmatprep.subr.bf16.mxu0 %v2700_v50 }
0x1004   :  { %v2639_v34 = vpop.eup %2638  ;;  %2644 = vpow2.f32 %v1551_v49 }
0x1005   :  { %v1666_v61 = vpop.xlane.xlu1 %1665  ;;  %v1430_v62 = vsel %vm382_vm7, %v2639_v34, 0.0 }
0x1006   :  { %v1670_v63 = vsub.f32 %v1658_v30, %v1666_v61  ;;  %1431 = vadd.xlane.f32.xlu1 %v1430_v62 }
0x1007   :  { %v1669_v1 = vpop.xlane.xlu0 %1668 }
0x1008   :  { %v2641_v2 = vpop.eup %2640  ;;  %v1672_v4 = vmul.f32 1.442695, %v1670_v63  ;;  %v1671_v5 = vsub.f32 %v1661_v37, %v1669_v1 }
0x1009   :  { %v1433_v6 = vsel %vm386_vm8, %v2641_v2, 0.0  ;;  %v1563_v33 = vpop.permute.xlu1 %1562  ;;  %v1438_v14 = vpack.c.bf16 %v2641_v2, %v2639_v34 }
0x100a   :  { %2646 = vpow2.f32 %v1672_v4  ;;  %v1674_v7 = vmul.f32 1.442695, %v1671_v5  ;;  %1434 = vadd.xlane.f32.xlu0 %v1433_v6  ;;  %v1568_v16 = vsel %vm215_vm1, %v1563_v33, 0 }
0x100b   :  { %v1440_v36 = vpop.permute.xlu0 %1439 }
0x100c   :  { %v2643_v8 = vpop.eup %2642  ;;  %2648 = vpow2.f32 %v1674_v7  ;;  %v1445_v35 = vsel %vm215_vm1, %v1440_v36, 0 }
0x100d   :  { %2434 = vmatpush3.bf16.msra.mxu1 %v1445_v35  ;;  %v1553_v10 = vsel %vm382_vm7, %v2643_v8, 0.0  ;;  %v1686_v19 = vpop.permute.xlu1 %1685 }
0x100e   :  { %v2645_v13 = vpop.eup %2644  ;;  %1554 = vadd.xlane.f32.xlu0 %v1553_v10  ;;  %2445 = vmatprep.subr.bf16.mxu1 %v2700_v50  ;;  %v1691_v23 = vsel %vm215_vm1, %v1686_v19, 0 }
0x100f   :  { %v1556_v18 = vsel %vm386_vm8, %v2645_v13, 0.0  ;;  %v1561_v3 = vpack.c.bf16 %v2645_v13, %v2643_v8 }
0x1010   :  { %2436 = vmatmul.mubr.msk.bf16.vlgmr.msra.gmra.mrb[36].mxu1 %vm382_vm7, %v1438_v14 }
0x1011   :  { %2446 = vmatpush3.bf16.msra.mxu1 %v1568_v16  ;;  %2447 = vmatprep.mubr.msk.bf16.mxu1 %vm2701_vm5, %v2700_v50 }
0x1012   :  { %1557 = vadd.xlane.f32.xlu0 %v1556_v18  ;;  %2457 = vmatprep.subr.bf16.mxu1 %v2700_v50 }
0x1014   :  { %v2647_v0 = vpop.eup %2646 }
0x1015   :  { %v1676_v20 = vsel %vm382_vm7, %v2647_v0, 0.0 }
0x1016   :  { %v2649_v21 = vpop.eup %2648  ;;  %1677 = vadd.xlane.f32.xlu1 %v1676_v20 }
0x1017   :  { %v1679_v22 = vsel %vm386_vm8, %v2649_v21, 0.0  ;;  %v1684_v26 = vpack.c.bf16 %v2649_v21, %v2647_v0 }
0x1018   :  { %1680 = vadd.xlane.f32.xlu0 %v1679_v22  ;;  %2448 = vmatmul.mubr.msk.bf16.vlgmr.msra.gmra.mrb[40].mxu1 %vm382_vm7, %v1561_v3 }
0x1019   :  { %2458 = vmatpush3.bf16.msra.mxu1 %v1691_v23  ;;  %2459 = vmatprep.mubr.msk.bf16.mxu1 %vm2701_vm5, %v2700_v50 }
0x101a   :  { %1308 = vadd.xlane.f32.xlu1 %v1307_v24  ;;  %2471 = vmatprep.subr.bf16.mxu1 %v2700_v50 }
0x101c   :  { %1311 = vadd.xlane.f32.xlu0 %v1310_v25 }
0x1020   :  { %2460 = vmatmul.mubr.msk.bf16.vlgmr.msra.gmra.mrb[44].mxu1 %vm382_vm7, %v1684_v26 }
0x1021   :  { %2475 = vmatprep.mubr.msk.bf16.mxu1 %vm2701_vm5, %v2700_v50 }
0x1093   :  { %v1432_v30 = vpop.xlane.xlu1 %1431 }
0x1094   :  { %2650 = vrcp.f32 %v1432_v30 }
0x1097   :  { %v1435_v27 = vpop.xlane.xlu0 %1434 }
0x1098   :  { %2652 = vrcp.f32 %v1435_v27 }
0x109b   :  { %v1555_v32 = vpop.xlane.xlu0 %1554 }
0x109c   :  { %2654 = vrcp.f32 %v1555_v32 }
0x109e   :  { %v2651_v39 = vpop.eup %2650 }
0x109f   :  { %v1558_v37 = vpop.xlane.xlu0 %1557 }
0x10a0   :  { %2656 = vrcp.f32 %v1558_v37 }
0x10a2   :  { %v2653_v15 = vpop.eup %2652 }
0x10a3   :  { %v1678_v44 = vpop.xlane.xlu1 %1677 }
0x10a4   :  { %2658 = vrcp.f32 %v1678_v44 }
0x10a5   :  { %v1681_v46 = vpop.xlane.xlu0 %1680 }
0x10a6   :  { %2660 = vrcp.f32 %v1681_v46  ;;  %v2655_v52 = vpop.eup %2654 }
0x10a7   :  { %v1309_v5 = vpop.xlane.xlu1 %1308 }
0x10a8   :  { %2662 = vrcp.f32 %v1309_v5  ;;  %v2581_v5 = vld [vmem:[%s3259_s1 + $0x108] sm:$0xff]  }
0x10a9   :  { %v1312_v6 = vpop.xlane.xlu0 %1311 }
0x10aa   :  { %v2657_v54 = vpop.eup %2656  ;;  %2664 = vrcp.f32 %v1312_v6  ;;  %v2582_v6 = vld [vmem:[%s3259_s1 + $0x110] sm:$0xff]  }
0x10ae   :  { %v2659_v49 = vpop.eup %2658 }
0x10b0   :  { %v2661_v61 = vpop.eup %2660 }
0x10b2   :  { %v2663_v8 = vpop.eup %2662 }
0x10b4   :  { %v2665_v10 = vpop.eup %2664 }
0x10d4   :  { %v3150_v28 = vpop.f32.mrb[32].mxu1 }
0x10d5   :  { %v2425_v29 = vpop.f32.mrb[33].mxu1  ;;  %v1365_v16 = vmul.f32 %v2663_v8, %v3150_v28  ;;  %v2219_v28 = vld [vmem:[%s3260_s2 + $0x11] ss:$0 sm:$0xff] }
0x10d6   :  { %v1361_v12 = vpop.f32.mrb[34].mxu1 }
0x10d7   :  { %v2426_v31 = vpop.f32.mrb[35].mxu1  ;;  %v1366_v18 = vmul.f32 %v2665_v10, %v1361_v12 }
0x10e3   :  { %v1481_v38 = vpop.f32.mrb[36].mxu1 }
0x10e4   :  { %v2437_v40 = vpop.f32.mrb[37].mxu1  ;;  %v1488_v42 = vmul.f32 %v2651_v39, %v1481_v38 }
0x10e5   :  { %v1484_v41 = vpop.f32.mrb[38].mxu1 }
0x10e6   :  { %v1489_v17 = vmul.f32 %v2653_v15, %v1484_v41  ;;  %v2438_v43 = vpop.f32.mrb[39].mxu1 }
0x10e8   :  { %v2531_v48 = vpack.i.bf16 %v1489_v17, %v1488_v42 }
0x10ea   :  { %2532 = vrot.lane.b32.xlu1 %v2531_v48, %s2713_s21  ;;  %v2578_v48 = vld [vmem:[%s3259_s1 + $0xf0] sm:$0xff]  }
0x10eb   :  { %v1604_v51 = vpop.f32.mrb[40].mxu1  ;;  %2472 = vmatpush3.bf16.msra.mxu1 %v2578_v48  ;;  %v2584_v48 = vld [vmem:[%s3259_s1 + $0x120] sm:$0xff]  }
0x10ec   :  { %v2449_v53 = vpop.f32.mrb[41].mxu1  ;;  %v1611_v56 = vmul.f32 %v2655_v52, %v1604_v51  ;;  %v2579_v51 = vld [vmem:[%s3259_s1 + $0xf8] sm:$0xff]   ;;  %2473 = vmatprep.subr.bf16.mxu1 %v2700_v50 }
0x10ed   :  { %v1607_v55 = vpop.f32.mrb[42].mxu1 }
0x10ee   :  { %v1612_v57 = vmul.f32 %v2657_v54, %v1607_v55  ;;  %v2450_v58 = vpop.f32.mrb[43].mxu1 }
0x10ef   :  { %2474 = vmatpush3.bf16.msra.mxu1 %v2579_v51 }
0x10f0   :  { %v2536_v60 = vpack.i.bf16 %v1612_v57, %v1611_v56  ;;  %2491 = vmatprep.subr.bf16.mxu1 %v2700_v50 }
0x10f2   :  { %2537 = vrot.lane.b32.xlu0 %v2536_v60, %s2714_s22 }
0x10f3   :  { %v1727_v47 = vpop.f32.mrb[44].mxu1 }
0x10f4   :  { %v2461_v34 = vpop.f32.mrb[45].mxu1  ;;  %v1734_v63 = vmul.f32 %v2659_v49, %v1727_v47 }
0x10f5   :  { %v1730_v62 = vpop.f32.mrb[46].mxu1 }
0x10f6   :  { %v1735_v1 = vmul.f32 %v2661_v61, %v1730_v62  ;;  %v2462_v2 = vpop.f32.mrb[47].mxu1  ;;  %v2221_v61 = vld [vmem:[%s3260_s2 + $0x13] ss:$0 sm:$0xff] }
0x10f8   :  { %v2541_v4 = vpack.i.bf16 %v1735_v1, %v1734_v63 }
0x10fa   :  { %2542 = vrot.lane.b32.xlu1 %v2541_v4, %s2715_s25  ;;  %v2580_v4 = vld [vmem:[%s3259_s1 + $0x100] sm:$0xff]  }
0x115c   :  { %v2533_v7 = vpop.permute.xlu1 %2532 }
0x115d   :  { %v2535_v35 = vunpack.i.h.bf16 %v2533_v7  ;;  %v2534_v33 = vunpack.i.l.bf16 %v2533_v7  ;;  %v2583_v7 = vld [vmem:[%s3259_s1 + $0x118] sm:$0xff]  }
0x115f   :  { %v1761_v19 = vsel %vm334_vm6, %v1366_v18, %v2535_v35  ;;  %v1760_v20 = vsel %vm334_vm6, %v1365_v16, %v2534_v33 }
0x1164   :  { %v2538_v36 = vpop.permute.xlu0 %2537 }
0x1165   :  { %v2540_v13 = vunpack.i.h.bf16 %v2538_v36  ;;  %v2539_v14 = vunpack.i.l.bf16 %v2538_v36  ;;  %v2222_v36 = vld [vmem:[%s3260_s2 + $0x14] ss:$0 sm:$0xff] }
0x1167   :  { %v1763_v22 = vsel %vm851_vm9, %v1761_v19, %v2540_v13  ;;  %v1762_v23 = vsel %vm851_vm9, %v1760_v20, %v2539_v14 }
0x116c   :  { %v2543_v0 = vpop.permute.xlu1 %2542 }
0x116d   :  { %v2545_v21 = vunpack.i.h.bf16 %v2543_v0  ;;  %v2544_v3 = vunpack.i.l.bf16 %v2543_v0 }
0x116f   :  { %v1765_v24 = vsel %vm854_vm10, %v1763_v22, %v2545_v21  ;;  %v1764_v25 = vsel %vm854_vm10, %v1762_v23, %v2544_v3 }
0x1170   :  { %v1770_v26 = vpack.c.bf16 %v1765_v24, %v1764_v25 }
0x1172   :  { %2468 = vmatmul.mubr.msk.bf16.vlgmr.msra.gmra.mrb[40].mxu0 %vm223_vm3, %v1770_v26 }
0x1173   :  { %2487 = vmatprep.mubr.msk.bf16.mxu0 %vm2701_vm5, %v2700_v50  ;;  %2480 = vmatpush3.bf16.msra.mxu0 %v2580_v4 }
0x1174   :  { %2481 = vmatprep.subr.bf16.mxu0 %v2700_v50 }
0x1177   :  { %2482 = vmatpush3.bf16.msra.mxu0 %v2581_v5 }
0x1178   :  { %2483 = vmatprep.subr.bf16.mxu0 %v2700_v50 }
0x117b   :  { %2484 = vmatpush3.bf16.msra.mxu0 %v2582_v6 }
0x117c   :  { %2485 = vmatprep.subr.bf16.mxu0 %v2700_v50 }
0x117f   :  { %2486 = vmatpush3.bf16.msra.mxu0 %v2583_v7 }
0x1245   :  { %v1820_v27 = vpop.f32.mrb[40].mxu0 }
0x1246   :  { %v1827_v29 = vadd.f32 %v1820_v27, %v3028_v9  ;;  %v2469_v12 = vpop.f32.mrb[41].mxu0 }
0x1247   :  { %v1823_v30 = vpop.f32.mrb[42].mxu0 }
0x1248   :  { %v3177_v31 = vadd.f32 %v2219_v28, %v1827_v29  ;;  %v1828_v32 = vadd.f32 %v1823_v30, %v3031_v11  ;;  %v2470_v37 = vpop.f32.mrb[43].mxu0 }
0x124a   :  { %v1838_v38 = vsel %vm223_vm3, %v3177_v31, 0.0  ;;  %v1835_v39 = vadd.f32 %v2219_v28, %v1828_v32 }
0x124b   :  { %1839 = vadd.xlane.f32.xlu1 %v1838_v38 }
0x124c   :  { %v1841_v40 = vsel %vm227_vm4, %v1835_v39, 0.0 }
0x124d   :  { %1842 = vadd.xlane.f32.xlu0 %v1841_v40 }
0x12d8   :  { %v1840_v15 = vpop.xlane.xlu1 %1839 }
0x12d9   :  { %v1844_v41 = vmul.f32 0.03125, %v1840_v15 }
0x12da   :  { %v1843_v42 = vpop.xlane.xlu0 %1842 }
0x12db   :  { %v1846_v9 = vsub.f32 %v3177_v31, %v1844_v41  ;;  %v1845_v17 = vmul.f32 0.03125, %v1843_v42 }
0x12dd   :  { %v1847_v43 = vsub.f32 %v1835_v39, %v1845_v17  ;;  %v1848_v44 = vmul.f32 %v1846_v9, %v1846_v9  ;;  %v2231_v39 = vld [vmem:[%s3260_s2 + $0x15] ss:$0 sm:$0xff] }
0x12df   :  { %v1850_v45 = vsel %vm223_vm3, %v1848_v44, 0.0  ;;  %v1849_v11 = vmul.f32 %v1847_v43, %v1847_v43 }
0x12e0   :  { %1851 = vadd.xlane.f32.xlu0 %v1850_v45 }
0x12e1   :  { %v1853_v46 = vsel %vm227_vm4, %v1849_v11, 0.0 }
0x12e2   :  { %1854 = vadd.xlane.f32.xlu1 %v1853_v46 }
0x136d   :  { %v1852_v52 = vpop.xlane.xlu0 %1851 }
0x136e   :  { %v1856_v53 = vmul.f32 0.03125, %v1852_v52 }
0x136f   :  { %v1855_v54 = vpop.xlane.xlu1 %1854 }
0x1370   :  { %v1858_v55 = vadd.f32 1e-06, %v1856_v53  ;;  %v1857_v56 = vmul.f32 0.03125, %v1855_v54 }
0x1372   :  { %2666 = vrsqrt.f32 %v1858_v55  ;;  %v1859_v57 = vadd.f32 1e-06, %v1857_v56  ;;  %v2232_v55 = vld [vmem:[%s3260_s2 + $0x16] ss:$0 sm:$0xff] }
0x1374   :  { %2668 = vrsqrt.f32 %v1859_v57  ;;  %v2233_v57 = vld [vmem:[%s3260_s2 + $0x17] ss:$0 sm:$0xff] }
0x137c   :  { %v2667_v58 = vpop.eup %2666 }
0x137d   :  { %v1862_v60 = vmul.f32 %v2667_v58, %v1846_v9 }
0x137e   :  { %v2669_v47 = vpop.eup %2668 }
0x137f   :  { %v1868_v49 = vmul.f32 %v2220_v59, %v1862_v60  ;;  %v1863_v34 = vmul.f32 %v2669_v47, %v1847_v43 }
0x1381   :  { %v1869_v62 = vmul.f32 %v2220_v59, %v1863_v34  ;;  %v1874_v63 = vadd.f32 %v2221_v61, %v1868_v49  ;;  %v2234_v49 = vld [vmem:[%s3260_s2 + $0x18] ss:$0 sm:$0xff] }
0x1383   :  { %v1875_v1 = vadd.f32 %v2221_v61, %v1869_v62 }
0x1385   :  { %v1880_v2 = vpack.c.bf16 %v1875_v1, %v1874_v63 }
0x1387   :  { %2476 = vmatmul.mubr.msk.bf16.vlgmr.msra.gmra.mrb[48].mxu1 %vm223_vm3, %v1880_v2 }
0x1388   :  { %2495 = vmatprep.mubr.msk.bf16.mxu1 %vm2701_vm5, %v2700_v50  ;;  %2492 = vmatpush3.bf16.msra.mxu1 %v2584_v48 }
0x1389   :  { %2493 = vmatprep.subr.bf16.mxu1 %v2700_v50 }
0x145a   :  { %v1935_v8 = vpop.f32.mrb[48].mxu1 }
0x145b   :  { %v1936_v35 = vadd.f32 %v2222_v36, %v1935_v8  ;;  %v2477_v33 = vpop.f32.mrb[49].mxu1 }
0x145c   :  { %v1938_v10 = vpop.f32.mrb[50].mxu1 }
0x145d   :  { %v1944_v13 = vmul.f32 0.044715, %v1936_v35  ;;  %v1939_v14 = vadd.f32 %v2222_v36, %v1938_v10  ;;  %v2478_v16 = vpop.f32.mrb[51].mxu1  ;;  %v1942_v28 = vmul.f32 0.5, %v1936_v35 }
0x145f   :  { %v1946_v18 = vmul.f32 %v1944_v13, %v1936_v35  ;;  %v1945_v0 = vmul.f32 0.044715, %v1939_v14  ;;  %v1943_v29 = vmul.f32 0.5, %v1939_v14 }
0x1461   :  { %v1948_v19 = vmul.f32 %v1946_v18, %v1936_v35  ;;  %v1947_v20 = vmul.f32 %v1945_v0, %v1939_v14 }
0x1463   :  { %v1950_v21 = vadd.f32 %v1948_v19, %v1936_v35  ;;  %v1949_v3 = vmul.f32 %v1947_v20, %v1939_v14 }
0x1465   :  { %v1952_v22 = vmul.f32 0.7978846, %v1950_v21  ;;  %v1951_v23 = vadd.f32 %v1949_v3, %v1939_v14 }
0x1467   :  { %2670 = vtanh.f32 %v1952_v22  ;;  %v1953_v24 = vmul.f32 0.7978846, %v1951_v23 }
0x1469   :  { %2672 = vtanh.f32 %v1953_v24 }
0x1471   :  { %v2671_v25 = vpop.eup %2670 }
0x1472   :  { %v1956_v26 = vadd.f32 1.0, %v2671_v25 }
0x1473   :  { %v2673_v27 = vpop.eup %2672 }
0x1474   :  { %v1957_v12 = vadd.f32 1.0, %v2673_v27  ;;  %v1958_v30 = vmul.f32 %v1956_v26, %v1942_v28 }
0x1476   :  { %v1959_v32 = vmul.f32 %v1957_v12, %v1943_v29 }
0x1478   :  { %v1968_v37 = vpack.c.bf16 %v1959_v32, %v1958_v30 }
0x147a   :  { %2488 = vmatmul.mubr.msk.bf16.vlgmr.msra.gmra.mrb[44].mxu0 %vm1084_vm11, %v1968_v37 }
0x154d   :  { %v2030_v38 = vpop.f32.mrb[44].mxu0 }
0x154e   :  { %v2036_v40 = vadd.f32 %v2030_v38, %v3177_v31  ;;  %v2489_v15 = vpop.f32.mrb[45].mxu0  ;;  %v2585_v31 = vld [vmem:[%s3259_s1 + $0x128] sm:$0xff]  }
0x154f   :  { %v2033_v41 = vpop.f32.mrb[46].mxu0  ;;  %2494 = vmatpush3.bf16.msra.mxu1 %v2585_v31 }
0x1550   :  { %v2490_v42 = vpop.f32.mrb[47].mxu0  ;;  %v2042_v9 = vadd.f32 %v2231_v39, %v2036_v40 }
0x1552   :  { %v2045_v17 = vsel %vm223_vm3, %v2042_v9, 0.0 }
0x1553   :  { %2046 = vadd.xlane.f32.xlu0 %v2045_v17 }
0x15e0   :  { %v2047_v43 = vpop.xlane.xlu0 %2046 }
0x15e1   :  { %v2048_v44 = vmul.f32 0.03125, %v2047_v43 }
0x15e3   :  { %v2049_v45 = vsub.f32 %v2042_v9, %v2048_v44 }
0x15e5   :  { %v2050_v11 = vmul.f32 %v2049_v45, %v2049_v45 }
0x15e7   :  { %v2051_v46 = vsel %vm223_vm3, %v2050_v11, 0.0 }
0x15e8   :  { %2052 = vadd.xlane.f32.xlu1 %v2051_v46 }
0x1675   :  { %v2053_v51 = vpop.xlane.xlu1 %2052 }
0x1676   :  { %v2054_v52 = vmul.f32 0.03125, %v2053_v51 }
0x1678   :  { %v2055_v53 = vadd.f32 1e-06, %v2054_v52 }
0x167a   :  { %2674 = vrsqrt.f32 %v2055_v53 }
0x1684   :  { %v2675_v54 = vpop.eup %2674 }
0x1685   :  { %v2057_v56 = vmul.f32 %v2675_v54, %v2049_v45 }
0x1687   :  { %v2062_v58 = vmul.f32 %v2232_v55, %v2057_v56 }
0x1689   :  { %v2067_v59 = vadd.f32 %v2233_v57, %v2062_v58 }
0x168b   :  { %v2069_v60 = vrot.slane %v2067_v59, 4 }
0x168d   :  { %v2071_v50 = vsel %vm213_vm0, %v2067_v59, %v2069_v60 }
0x168e   :  { %v2076_v47 = vpack.c.bf16 %v2071_v50, %v2071_v50 }
0x1690   :  { %2496 = vmatmul.mubr.msk.bf16.vlgmr.msra.gmra.mrb[52].mxu1 %vm223_vm3, %v2076_v47 }
0x1763   :  { %v2131_v34 = vpop.f32.mrb[52].mxu1 }
0x1764   :  { %v2132_v61 = vadd.f32 %v2234_v49, %v2131_v34  ;;  %v2497_v62 = vpop.f32.mrb[53].mxu1 }
0x1765   :  { %v2134_v63 = vpop.f32.mrb[54].mxu1 }
0x1766   :  { %v2498_v1 = vpop.f32.mrb[55].mxu1  ;;  %2138 = vst.msk [vmem:[#allocation2] sm:$0x3] %vm2137_vm12, %v2132_v61 }
0x1767   :  { %2687 = shalt.err (!%p2684_p4)
}
0x1768   :  { %s2688_s2 = scalar_lea.hbm %s3261_s3, 32 }
0x1769   :  { %p2689_p5 = scmp.ne.s32.totalorder %s3261_s3, %s2688_s2  ;;  %p2692_p6 = scmp.lt.u32.totalorder %s2688_s2, %s3261_s3 }
0x176b   :  { %p2694_p7 = pnand %p2692_p6, %p2689_p5 }
0x176d   :  { %2697 = shalt.err (!%p2694_p7)
}
0x176e   :  { %2148 = dma.vmem_to_hbm [thread:$0]  %s2146_s0, 32, %s3261_s3, [#allocation3]  }
0x176f   :  { %2698 = dma.done.wait [#allocation3], 32  }
0x1770   :  { %2699 = vsyncadd [#allocation3], 4294967264 }
0x1771   :  { %2152 = vsyncpa [#allocation3], 1 }

</bundles_post_ra>
